<compile_context>
chip_gen: v7x
topology: tpu7x:2x2x1
jax: 0.10.0
libtpu: 0.0.40
codegen_flags: <defaults>
</compile_context>

<pallas_src>
import functools
import math

import jax
import jax.numpy as jnp
from jax.experimental import pallas as pl
from jax.experimental.pallas import tpu as pltpu


def _supcon_kernel(feat_r_ref, featT_c_ref, lab_r_ref, lab_c_ref, out_ref,
                   m_sc, l_sc, cnt_sc, dot_sc,
                   *, inv_temp, n_valid, tile_m, tile_n, has_pad,
                   assume_normalized):
    """One (row-tile i, col-tile j) step of the streaming SupCon loss.

    feat_r_ref : [TM, Dp]  anchor rows (pre-scaled by sqrt(1/T), pre-cast)
    featT_c_ref: [Dp, TN]  contrast columns (transposed copy of the features)
    lab_r_ref  : [TM, 1]   even-encoded row labels
    lab_c_ref  : [1, TN]   even-encoded column labels (pad = odd sentinel)
    out_ref    : [TM, 1]   per-row mean log-prob of positives (last j only)
    scratch    : m_sc (running max), l_sc (masked sum-exp), cnt_sc (#pos),
                 dot_sc (sum of positive raw logits); all [TM, 1] f32.
    """
    i = pl.program_id(0)
    j = pl.program_id(1)

    @pl.when(j == 0)
    def _init():
        if not assume_normalized:
            m_sc[...] = jnp.full(m_sc.shape, -jnp.inf, dtype=jnp.float32)
        l_sc[...] = jnp.zeros(l_sc.shape, jnp.float32)
        cnt_sc[...] = jnp.zeros(cnt_sc.shape, jnp.float32)
        dot_sc[...] = jnp.zeros(dot_sc.shape, jnp.float32)

    # Logits tile.  Features were scaled by sqrt(1/T) once in the wrapper, so
    # raw == (f_i . f_j) / temperature with no extra per-element multiply.
    raw = jax.lax.dot_general(
        feat_r_ref[...], featT_c_ref[...],
        dimension_numbers=(((1,), (0,)), ((), ())),
        preferred_element_type=jnp.float32)                      # [TM, TN] f32

    # Positives: plain label equality.  Self / padded columns are removed by
    # the pl.when corrections below (padded labels are odd, real labels even).
    posf = (lab_r_ref[...] == lab_c_ref[...]).astype(jnp.float32)  # [TM, TN]

    # Online logsumexp of the denominator.  The stabilizing max may include
    # the self column and the (all-zero) padded columns -- it only needs to be
    # an upper bound; the final log-prob is independent of the max, matching
    # the torch reference exactly.
    if assume_normalized:
        m_used = inv_temp                       # raw <= 1/T for unit-norm feats
        e = jnp.exp(raw - inv_temp)
        l_sc[...] = l_sc[...] + jnp.sum(e, axis=1, keepdims=True)
    else:
        m_prev = m_sc[...]
        m_new = jnp.maximum(m_prev, jnp.max(raw, axis=1, keepdims=True))
        alpha = jnp.exp(m_prev - m_new)
        e = jnp.exp(raw - m_new)
        l_sc[...] = l_sc[...] * alpha + jnp.sum(e, axis=1, keepdims=True)
        m_sc[...] = m_new
        m_used = m_new

    cnt_sc[...] = cnt_sc[...] + jnp.sum(posf, axis=1, keepdims=True)
    dot_sc[...] = dot_sc[...] + jnp.sum(posf * raw, axis=1, keepdims=True)

    # --- self-column exclusion: only on tiles that intersect the diagonal ---
    touches_diag = jnp.logical_and(i * tile_m < (j + 1) * tile_n,
                                   j * tile_n < (i + 1) * tile_m)

    @pl.when(touches_diag)
    def _remove_self():
        row_g = i * tile_m + jax.lax.broadcasted_iota(jnp.int32, (tile_m, 1), 0)
        col_g = j * tile_n + jax.lax.broadcasted_iota(jnp.int32, (1, tile_n), 1)
        is_self = row_g == col_g                                  # [TM, TN]
        self_raw = jnp.sum(jnp.where(is_self, raw, 0.0), axis=1, keepdims=True)
        in_rng = jnp.sum(jnp.where(is_self, 1.0, 0.0), axis=1, keepdims=True)
        l_sc[...] = l_sc[...] - in_rng * jnp.exp(self_raw - m_used)
        cnt_sc[...] = cnt_sc[...] - in_rng        # diag always label-matches
        dot_sc[...] = dot_sc[...] - self_raw

    # --- padded-column exclusion from the denominator (their raw == 0) ------
    if has_pad:
        @pl.when((j + 1) * tile_n > n_valid)
        def _remove_pad():
            first_pad = jnp.maximum(j * tile_n, n_valid)
            k_pad = ((j + 1) * tile_n - first_pad).astype(jnp.float32)
            l_sc[...] = l_sc[...] - k_pad * jnp.exp(0.0 - m_used)

    @pl.when(j == pl.num_programs(1) - 1)
    def _finalize():
        cnt = cnt_sc[...]
        safe_cnt = jnp.where(cnt < 1e-6, 1.0, cnt)
        m_fin = inv_temp if assume_normalized else m_sc[...]
        lse = m_fin + jnp.log(l_sc[...])
        # sum_{p in positives} log_prob_p = sum_p raw_p - |P| * lse
        out_ref[...] = (dot_sc[...] - cnt * lse) / safe_cnt


def _round_up(x, m):
    return (x + m - 1) // m * m


def _pick_tile(cap):
    for t in (512, 256, 128):
        if t <= cap:
            return t
    return 128


def supcon_loss(data, next_data, labels=None, mask=None,
                temperature=0.07, contrast_mode='all', base_temperature=0.07,
                tile_m=None, tile_n=None, matmul_dtype=jnp.float32,
                assume_normalized=False):
    """SupConLoss forward (parity with the PyTorch module, contrast_mode='all').

    data, next_data: [bsz, ...] two feature views, flattened to [bsz, D].
    labels: optional [bsz] int class labels (SupCon); None -> SimCLR default.
    matmul_dtype: jnp.float32 (default, closest to torch) or jnp.bfloat16
        (halves HBM/VMEM feature traffic; logits drift ~1e-2 at T=0.07).
    assume_normalized: when features are L2-normalized, skips the online
        running max (constant 1/temperature stabilizer; do not use otherwise).
    """
    if contrast_mode != 'all':
        # TODO(synk): contrast_mode='one' (anchor = first view only) not implemented.
        raise NotImplementedError("only contrast_mode='all' is implemented")
    if labels is not None and mask is not None:
        raise ValueError('Cannot define both `labels` and `mask`')
    if mask is not None:
        # TODO(synk): explicit [bsz, bsz] contrastive-mask path not implemented in-kernel.
        raise NotImplementedError('explicit `mask` path not implemented')

    bsz = data.shape[0]
    feat = jnp.concatenate(
        [jnp.reshape(data, (bsz, -1)), jnp.reshape(next_data, (bsz, -1))],
        axis=0).astype(jnp.float32)                               # [N, D]
    n, d = feat.shape
    inv_temp = float(1.0 / temperature)

    if labels is None:
        lab_b = jnp.arange(bsz, dtype=jnp.int32)                  # SimCLR: eye(bsz)
    else:
        lab_b = jnp.asarray(labels, dtype=jnp.int32).reshape(-1)
        if lab_b.shape[0] != bsz:
            raise ValueError('Num of labels does not match num of features')
    # Even/odd encoding: real label -> 2*label (even), padding -> 1 (odd), so a
    # padded column can never be counted as a positive for a real row.
    lab = jnp.concatenate([lab_b, lab_b], axis=0) * 2             # [N] int32

    # ---- tile selection (MXU-width aware, VMEM budgeted) --------------------
    dp = _round_up(d, 128)
    n128 = _round_up(n, 128)
    if tile_n is None:
        tile_n = _pick_tile(n128)          # >=256 when N allows (v6e/v7x MXU width)
    if tile_m is None:
        tile_m = _pick_tile(n128)
        if tile_m >= n128 and n128 >= 256:  # keep >=2 row tiles for v7x's 2 TCs
            tile_m //= 2
    feat_bytes = jnp.dtype(matmul_dtype).itemsize
    budget = 40 * 1024 * 1024              # leaves headroom inside v7x's 64 MiB VMEM

    def _est(tm, tn):
        tiles = 2 * (tm * dp + dp * tn) * feat_bytes    # double-buffered feature tiles
        inter = 8 * tm * tn * 4                          # f32 tile intermediates headroom
        small = (12 * tm + 4 * tn) * 4                   # stats, labels, output
        return tiles + inter + small

    while _est(tile_m, tile_n) > budget and max(tile_m, tile_n) > 128:
        if tile_m >= tile_n:
            tile_m //= 2
        else:
            tile_n //= 2
    # TODO(synk): for very large feature dims (Dp >> 4K) also tile over D.

    align = math.lcm(tile_m, tile_n)
    npad = _round_up(n, align)
    has_pad = npad > n

    # ---- one-time feature preprocessing (scale, pad, cast, transpose) -------
    scale = jnp.float32(math.sqrt(inv_temp))
    feat_p = jnp.pad(feat * scale, ((0, npad - n), (0, dp - d)))
    feat_p = feat_p.astype(matmul_dtype)                          # [Np, Dp]
    featT_p = feat_p.T                                            # [Dp, Np]
    lab_p = jnp.pad(lab, (0, npad - n), constant_values=1)
    lab_row = lab_p.reshape(npad, 1)
    lab_col = lab_p.reshape(1, npad)

    grid = (npad // tile_m, npad // tile_n)
    kernel = functools.partial(
        _supcon_kernel, inv_temp=inv_temp, n_valid=n,
        tile_m=tile_m, tile_n=tile_n, has_pad=has_pad,
        assume_normalized=assume_normalized)

    vmem_limit = int(min(56 * 1024 * 1024,
                         max(32 * 1024 * 1024, 2 * _est(tile_m, tile_n))))

    mean_log_prob_pos = pl.pallas_call(
        kernel,
        out_shape=jax.ShapeDtypeStruct((npad, 1), jnp.float32),
        grid=grid,
        in_specs=[
            pl.BlockSpec((tile_m, dp), lambda i, j: (i, 0)),   # anchor row tile
            pl.BlockSpec((dp, tile_n), lambda i, j: (0, j)),   # contrast col tile (pre-T)
            pl.BlockSpec((tile_m, 1), lambda i, j: (i, 0)),    # row labels
            pl.BlockSpec((1, tile_n), lambda i, j: (0, j)),    # col labels
        ],
        out_specs=pl.BlockSpec((tile_m, 1), lambda i, j: (i, 0)),
        scratch_shapes=[pltpu.VMEM((tile_m, 1), jnp.float32)] * 4,
        compiler_params=pltpu.CompilerParams(
            dimension_semantics=("parallel", "arbitrary"),
            vmem_limit_bytes=vmem_limit),
    )(feat_p, featT_p, lab_row, lab_col)

    # loss.view(anchor_count, bsz).mean() == mean over the N real anchor rows
    # (padded rows carry garbage and are sliced away).
    return -(temperature / base_temperature) * jnp.mean(mean_log_prob_pos[:n, 0])


def _supcon_loss_ref(data, next_data, labels=None,
                     temperature=0.07, base_temperature=0.07):
    """Pure-JAX reference mirroring the PyTorch forward (contrast_mode='all')."""
    bsz = data.shape[0]
    feat = jnp.concatenate(
        [data.reshape(bsz, -1), next_data.reshape(bsz, -1)], 0).astype(jnp.float32)
    n = 2 * bsz
    if labels is None:
        mask_bb = jnp.eye(bsz, dtype=jnp.float32)
    else:
        lab = jnp.asarray(labels).reshape(-1, 1)
        mask_bb = (lab == lab.T).astype(jnp.float32)
    adc = jnp.matmul(feat, feat.T, precision=jax.lax.Precision.HIGHEST) / temperature
    logits = adc - jnp.max(adc, axis=1, keepdims=True)
    logits_mask = 1.0 - jnp.eye(n, dtype=jnp.float32)
    pos_mask = jnp.tile(mask_bb, (2, 2)) * logits_mask
    exp_logits = jnp.exp(logits) * logits_mask
    log_prob = logits - jnp.log(exp_logits.sum(1, keepdims=True))
    mpp = pos_mask.sum(1)
    mpp = jnp.where(mpp < 1e-6, 1.0, mpp)
    mean_log_prob_pos = (pos_mask * log_prob).sum(1) / mpp
    loss = -(temperature / base_temperature) * mean_log_prob_pos
    return loss.reshape(2, bsz).mean()


if __name__ == "__main__":
    key = jax.random.PRNGKey(0)
    k1, k2, k3, k4, k5, k6 = jax.random.split(key, 6)

    def _norm(x):
        return x / jnp.linalg.norm(x, axis=1, keepdims=True)

    # --- Test 1: SimCLR default path, single tile, f32 MXU ------------------
    bsz, d = 64, 32
    a = _norm(jax.random.normal(k1, (bsz, d), dtype=jnp.float32))
    b = _norm(jax.random.normal(k2, (bsz, d), dtype=jnp.float32))
    loss = supcon_loss(a, b)
    jax.block_until_ready(loss)
    ref = _supcon_loss_ref(a, b)
    assert bool(jnp.isfinite(loss)), loss
    assert jnp.allclose(loss, ref, rtol=2e-2, atol=2e-2), (loss, ref)

    # --- Test 2: assume_normalized fast path (constant stabilizer) ----------
    loss_n = supcon_loss(a, b, assume_normalized=True)
    jax.block_until_ready(loss_n)
    assert jnp.allclose(loss_n, ref, rtol=2e-2, atol=2e-2), (loss_n, ref)

    # --- Test 3: bf16 MXU inputs (pre-cast once in HBM) ----------------------
    loss_bf16 = supcon_loss(a, b, matmul_dtype=jnp.bfloat16)
    jax.block_until_ready(loss_bf16)
    assert jnp.allclose(loss_bf16, ref, rtol=6e-2, atol=6e-2), (loss_bf16, ref)

    # --- Test 4: supervised labels, ragged N/D (pad corrections) ------------
    bsz2, d2 = 10, 48
    a2 = _norm(jax.random.normal(k3, (bsz2, d2), dtype=jnp.float32))
    b2 = _norm(jax.random.normal(k4, (bsz2, d2), dtype=jnp.float32))
    lab2 = jnp.arange(bsz2, dtype=jnp.int32) % 3
    loss2 = supcon_loss(a2, b2, labels=lab2)
    jax.block_until_ready(loss2)
    ref2 = _supcon_loss_ref(a2, b2, labels=lab2)
    assert jnp.allclose(loss2, ref2, rtol=2e-2, atol=2e-2), (loss2, ref2)

    # --- Test 5: multi-tile grid (2x2 tiles of 256) incl. off-diagonal path --
    bsz3, d3 = 144, 40
    a3 = _norm(jax.random.normal(k5, (bsz3, d3), dtype=jnp.float32))
    b3 = _norm(jax.random.normal(k6, (bsz3, d3), dtype=jnp.float32))
    lab3 = jnp.arange(bsz3, dtype=jnp.int32) % 7
    loss3 = supcon_loss(a3, b3, labels=lab3)
    jax.block_until_ready(loss3)
    ref3 = _supcon_loss_ref(a3, b3, labels=lab3)
    assert jnp.allclose(loss3, ref3, rtol=2e-2, atol=2e-2), (loss3, ref3)

    print("KERNEL_OK")
</pallas_src>

<mosaic_0001>
module attributes {stable_mosaic.version = 11 : i64} {
  func.func @_supcon_kernel(%arg0: i32, %arg1: i32, %arg2: memref<128x128xf32, #tpu.memory_space<vmem>>, %arg3: memref<128x128xf32, #tpu.memory_space<vmem>>, %arg4: memref<128x1xi32, #tpu.memory_space<vmem>>, %arg5: memref<1x128xi32, #tpu.memory_space<vmem>>, %arg6: memref<128x1xf32, #tpu.memory_space<vmem>>, %arg7: memref<128x1xf32, #tpu.memory_space<vmem>>, %arg8: memref<128x1xf32, #tpu.memory_space<vmem>>, %arg9: memref<128x1xf32, #tpu.memory_space<vmem>>, %arg10: memref<128x1xf32, #tpu.memory_space<vmem>>) attributes {dimension_semantics = [#tpu.dimension_semantics<parallel>, #tpu.dimension_semantics<arbitrary>], iteration_bounds = array<i64: 1, 1>, scalar_prefetch = 0 : i64, scratch_operands = 4 : i64, tpu.core_type = #tpu.core_type<tc>, window_params = [{transform_indices = @transform_0, window_bounds = array<i64: 128, 128>}, {transform_indices = @transform_1, window_bounds = array<i64: 128, 128>}, {transform_indices = @transform_2, window_bounds = array<i64: 128, 1>}, {transform_indices = @transform_3, window_bounds = array<i64: 1, 128>}, {transform_indices = @transform_4, window_bounds = array<i64: 128, 1>}]} {
    %c0_i32 = arith.constant 0 : i32
    %0 = arith.cmpi eq, %arg1, %c0_i32 : i32
    %1 = arith.extui %0 : i1 to i32
    %c0_i32_0 = arith.constant 0 : i32
    %2 = arith.cmpi ne, %1, %c0_i32_0 : i32
    scf.if %2 {
      %cst_35 = arith.constant 0xFF800000 : f32
      %54 = vector.broadcast %cst_35 : f32 to vector<128x1xf32>
      %c0_36 = arith.constant 0 : index
      %c0_37 = arith.constant 0 : index
      %55 = vector.load %arg7[%c0_36, %c0_37] : memref<128x1xf32, #tpu.memory_space<vmem>>, vector<128x1xf32>
      tpu.vector_store %arg7[%c0_36, %c0_37], %54 {strides = array<i32>} : memref<128x1xf32, #tpu.memory_space<vmem>>, vector<128x1xf32>,
      %cst_38 = arith.constant 0.000000e+00 : f32
      %56 = vector.broadcast %cst_38 : f32 to vector<128x1xf32>
      %c0_39 = arith.constant 0 : index
      %c0_40 = arith.constant 0 : index
      %57 = vector.load %arg8[%c0_39, %c0_40] : memref<128x1xf32, #tpu.memory_space<vmem>>, vector<128x1xf32>
      tpu.vector_store %arg8[%c0_39, %c0_40], %56 {strides = array<i32>} : memref<128x1xf32, #tpu.memory_space<vmem>>, vector<128x1xf32>,
      %cst_41 = arith.constant 0.000000e+00 : f32
      %58 = vector.broadcast %cst_41 : f32 to vector<128x1xf32>
      %c0_42 = arith.constant 0 : index
      %c0_43 = arith.constant 0 : index
      %59 = vector.load %arg9[%c0_42, %c0_43] : memref<128x1xf32, #tpu.memory_space<vmem>>, vector<128x1xf32>
      tpu.vector_store %arg9[%c0_42, %c0_43], %58 {strides = array<i32>} : memref<128x1xf32, #tpu.memory_space<vmem>>, vector<128x1xf32>,
      %cst_44 = arith.constant 0.000000e+00 : f32
      %60 = vector.broadcast %cst_44 : f32 to vector<128x1xf32>
      %c0_45 = arith.constant 0 : index
      %c0_46 = arith.constant 0 : index
      %61 = vector.load %arg10[%c0_45, %c0_46] : memref<128x1xf32, #tpu.memory_space<vmem>>, vector<128x1xf32>
      tpu.vector_store %arg10[%c0_45, %c0_46], %60 {strides = array<i32>} : memref<128x1xf32, #tpu.memory_space<vmem>>, vector<128x1xf32>,
    } else {
    }
    %c0 = arith.constant 0 : index
    %c0_1 = arith.constant 0 : index
    %3 = vector.load %arg2[%c0, %c0_1] : memref<128x128xf32, #tpu.memory_space<vmem>>, vector<128x128xf32>
    %c0_2 = arith.constant 0 : index
    %c0_3 = arith.constant 0 : index
    %4 = vector.load %arg3[%c0_2, %c0_3] : memref<128x128xf32, #tpu.memory_space<vmem>>, vector<128x128xf32>
    %cst = arith.constant dense<0.000000e+00> : vector<128x128xf32>
    %5 = tpu.matmul %3, %4, %cst {dimension_numbers = #tpu.dot_dimension_numbers<[1], [0], [0], [1], [0, 0, 1, 1], [], []>} : vector<128x128xf32>, vector<128x128xf32>, vector<128x128xf32> -> vector<128x128xf32>
    %c0_4 = arith.constant 0 : index
    %c0_5 = arith.constant 0 : index
    %6 = vector.load %arg4[%c0_4, %c0_5] : memref<128x1xi32, #tpu.memory_space<vmem>>, vector<128x1xi32>
    %c0_6 = arith.constant 0 : index
    %c0_7 = arith.constant 0 : index
    %7 = vector.load %arg5[%c0_6, %c0_7] : memref<1x128xi32, #tpu.memory_space<vmem>>, vector<1x128xi32>
    %8 = vector.broadcast %6 : vector<128x1xi32> to vector<128x128xi32>
    %9 = vector.broadcast %7 : vector<1x128xi32> to vector<128x128xi32>
    %10 = arith.cmpi eq, %8, %9 : vector<128x128xi32>
    %11 = arith.extui %10 : vector<128x128xi1> to vector<128x128xi32>
    %12 = arith.sitofp %11 : vector<128x128xi32> to vector<128x128xf32>
    %c0_8 = arith.constant 0 : index
    %c0_9 = arith.constant 0 : index
    %13 = vector.load %arg7[%c0_8, %c0_9] : memref<128x1xf32, #tpu.memory_space<vmem>>, vector<128x1xf32>
    %cst_10 = arith.constant dense<0xFF800000> : vector<128xf32>
    %14 = vector.multi_reduction <maximumf>, %5, %cst_10 [1] : vector<128x128xf32> to vector<128xf32>
    %15 = vector.shape_cast %14 : vector<128xf32> to vector<128x1xf32>
    %16 = arith.maximumf %13, %15 : vector<128x1xf32>
    %17 = arith.subf %13, %16 : vector<128x1xf32>
    %18 = math.exp %17 : vector<128x1xf32>
    %19 = vector.broadcast %16 : vector<128x1xf32> to vector<128x128xf32>
    %20 = arith.subf %5, %19 : vector<128x128xf32>
    %21 = math.exp %20 : vector<128x128xf32>
    %c0_11 = arith.constant 0 : index
    %c0_12 = arith.constant 0 : index
    %22 = vector.load %arg8[%c0_11, %c0_12] : memref<128x1xf32, #tpu.memory_space<vmem>>, vector<128x1xf32>
    %23 = arith.mulf %22, %18 : vector<128x1xf32>
    %cst_13 = arith.constant dense<0.000000e+00> : vector<128xf32>
    %24 = vector.multi_reduction <add>, %21, %cst_13 [1] : vector<128x128xf32> to vector<128xf32>
    %25 = vector.shape_cast %24 : vector<128xf32> to vector<128x1xf32>
    %26 = arith.addf %23, %25 : vector<128x1xf32>
    %c0_14 = arith.constant 0 : index
    %c0_15 = arith.constant 0 : index
    %27 = vector.load %arg8[%c0_14, %c0_15] : memref<128x1xf32, #tpu.memory_space<vmem>>, vector<128x1xf32>
    tpu.vector_store %arg8[%c0_14, %c0_15], %26 {strides = array<i32>} : memref<128x1xf32, #tpu.memory_space<vmem>>, vector<128x1xf32>,
    %c0_16 = arith.constant 0 : index
    %c0_17 = arith.constant 0 : index
    %28 = vector.load %arg7[%c0_16, %c0_17] : memref<128x1xf32, #tpu.memory_space<vmem>>, vector<128x1xf32>
    tpu.vector_store %arg7[%c0_16, %c0_17], %16 {strides = array<i32>} : memref<128x1xf32, #tpu.memory_space<vmem>>, vector<128x1xf32>,
    %c0_18 = arith.constant 0 : index
    %c0_19 = arith.constant 0 : index
    %29 = vector.load %arg9[%c0_18, %c0_19] : memref<128x1xf32, #tpu.memory_space<vmem>>, vector<128x1xf32>
    %cst_20 = arith.constant dense<0.000000e+00> : vector<128xf32>
    %30 = vector.multi_reduction <add>, %12, %cst_20 [1] : vector<128x128xf32> to vector<128xf32>
    %31 = vector.shape_cast %30 : vector<128xf32> to vector<128x1xf32>
    %32 = arith.addf %29, %31 : vector<128x1xf32>
    %c0_21 = arith.constant 0 : index
    %c0_22 = arith.constant 0 : index
    %33 = vector.load %arg9[%c0_21, %c0_22] : memref<128x1xf32, #tpu.memory_space<vmem>>, vector<128x1xf32>
    tpu.vector_store %arg9[%c0_21, %c0_22], %32 {strides = array<i32>} : memref<128x1xf32, #tpu.memory_space<vmem>>, vector<128x1xf32>,
    %c0_23 = arith.constant 0 : index
    %c0_24 = arith.constant 0 : index
    %34 = vector.load %arg10[%c0_23, %c0_24] : memref<128x1xf32, #tpu.memory_space<vmem>>, vector<128x1xf32>
    %35 = arith.mulf %12, %5 : vector<128x128xf32>
    %cst_25 = arith.constant dense<0.000000e+00> : vector<128xf32>
    %36 = vector.multi_reduction <add>, %35, %cst_25 [1] : vector<128x128xf32> to vector<128xf32>
    %37 = vector.shape_cast %36 : vector<128xf32> to vector<128x1xf32>
    %38 = arith.addf %34, %37 : vector<128x1xf32>
    %c0_26 = arith.constant 0 : index
    %c0_27 = arith.constant 0 : index
    %39 = vector.load %arg10[%c0_26, %c0_27] : memref<128x1xf32, #tpu.memory_space<vmem>>, vector<128x1xf32>
    tpu.vector_store %arg10[%c0_26, %c0_27], %38 {strides = array<i32>} : memref<128x1xf32, #tpu.memory_space<vmem>>, vector<128x1xf32>,
    %c128_i32 = arith.constant 128 : i32
    %40 = arith.muli %arg0, %c128_i32 : i32
    %c1_i32 = arith.constant 1 : i32
    %41 = arith.addi %arg1, %c1_i32 : i32
    %c128_i32_28 = arith.constant 128 : i32
    %42 = arith.muli %41, %c128_i32_28 : i32
    %43 = arith.cmpi slt, %40, %42 : i32
    %c128_i32_29 = arith.constant 128 : i32
    %44 = arith.muli %arg1, %c128_i32_29 : i32
    %c1_i32_30 = arith.constant 1 : i32
    %45 = arith.addi %arg0, %c1_i32_30 : i32
    %c128_i32_31 = arith.constant 128 : i32
    %46 = arith.muli %45, %c128_i32_31 : i32
    %47 = arith.cmpi slt, %44, %46 : i32
    %48 = arith.andi %43, %47 : i1
    %49 = arith.extui %48 : i1 to i32
    %c0_i32_32 = arith.constant 0 : i32
    %50 = arith.cmpi ne, %49, %c0_i32_32 : i32
    scf.if %50 {
      %c128_i32_35 = arith.constant 128 : i32
      %54 = arith.muli %arg0, %c128_i32_35 : i32
      %55 = tpu.iota {dimensions = array<i32: 0>} : vector<128x1xi32>
      %56 = vector.broadcast %54 : i32 to vector<128x1xi32>
      %57 = arith.addi %56, %55 : vector<128x1xi32>
      %c128_i32_36 = arith.constant 128 : i32
      %58 = arith.muli %arg1, %c128_i32_36 : i32
      %59 = tpu.iota {dimensions = array<i32: 1>} : vector<1x128xi32>
      %60 = vector.broadcast %58 : i32 to vector<1x128xi32>
      %61 = arith.addi %60, %59 : vector<1x128xi32>
      %62 = vector.broadcast %57 : vector<128x1xi32> to vector<128x128xi32>
      %63 = vector.broadcast %61 : vector<1x128xi32> to vector<128x128xi32>
      %64 = arith.cmpi eq, %62, %63 : vector<128x128xi32>
      %cst_37 = arith.constant 0.000000e+00 : f32
      %65 = vector.broadcast %cst_37 : f32 to vector<128x128xf32>
      %66 = arith.select %64, %5, %65 : vector<128x128xi1>, vector<128x128xf32>
      %cst_38 = arith.constant dense<0.000000e+00> : vector<128xf32>
      %67 = vector.multi_reduction <add>, %66, %cst_38 [1] : vector<128x128xf32> to vector<128xf32>
      %68 = vector.shape_cast %67 : vector<128xf32> to vector<128x1xf32>
      %cst_39 = arith.constant 1.000000e+00 : f32
      %cst_40 = arith.constant 0.000000e+00 : f32
      %69 = vector.broadcast %cst_39 : f32 to vector<128x128xf32>
      %70 = vector.broadcast %cst_40 : f32 to vector<128x128xf32>
      %71 = arith.select %64, %69, %70 : vector<128x128xi1>, vector<128x128xf32>
      %cst_41 = arith.constant dense<0.000000e+00> : vector<128xf32>
      %72 = vector.multi_reduction <add>, %71, %cst_41 [1] : vector<128x128xf32> to vector<128xf32>
      %73 = vector.shape_cast %72 : vector<128xf32> to vector<128x1xf32>
      %c0_42 = arith.constant 0 : index
      %c0_43 = arith.constant 0 : index
      %74 = vector.load %arg8[%c0_42, %c0_43] : memref<128x1xf32, #tpu.memory_space<vmem>>, vector<128x1xf32>
      %75 = arith.subf %68, %16 : vector<128x1xf32>
      %76 = math.exp %75 : vector<128x1xf32>
      %77 = arith.mulf %73, %76 : vector<128x1xf32>
      %78 = arith.subf %74, %77 : vector<128x1xf32>
      %c0_44 = arith.constant 0 : index
      %c0_45 = arith.constant 0 : index
      %79 = vector.load %arg8[%c0_44, %c0_45] : memref<128x1xf32, #tpu.memory_space<vmem>>, vector<128x1xf32>
      tpu.vector_store %arg8[%c0_44, %c0_45], %78 {strides = array<i32>} : memref<128x1xf32, #tpu.memory_space<vmem>>, vector<128x1xf32>,
      %c0_46 = arith.constant 0 : index
      %c0_47 = arith.constant 0 : index
      %80 = vector.load %arg9[%c0_46, %c0_47] : memref<128x1xf32, #tpu.memory_space<vmem>>, vector<128x1xf32>
      %81 = arith.subf %80, %73 : vector<128x1xf32>
      %c0_48 = arith.constant 0 : index
      %c0_49 = arith.constant 0 : index
      %82 = vector.load %arg9[%c0_48, %c0_49] : memref<128x1xf32, #tpu.memory_space<vmem>>, vector<128x1xf32>
      tpu.vector_store %arg9[%c0_48, %c0_49], %81 {strides = array<i32>} : memref<128x1xf32, #tpu.memory_space<vmem>>, vector<128x1xf32>,
      %c0_50 = arith.constant 0 : index
      %c0_51 = arith.constant 0 : index
      %83 = vector.load %arg10[%c0_50, %c0_51] : memref<128x1xf32, #tpu.memory_space<vmem>>, vector<128x1xf32>
      %84 = arith.subf %83, %68 : vector<128x1xf32>
      %c0_52 = arith.constant 0 : index
      %c0_53 = arith.constant 0 : index
      %85 = vector.load %arg10[%c0_52, %c0_53] : memref<128x1xf32, #tpu.memory_space<vmem>>, vector<128x1xf32>
      tpu.vector_store %arg10[%c0_52, %c0_53], %84 {strides = array<i32>} : memref<128x1xf32, #tpu.memory_space<vmem>>, vector<128x1xf32>,
    } else {
    }
    %c0_i32_33 = arith.constant 0 : i32
    %51 = arith.cmpi eq, %arg1, %c0_i32_33 : i32
    %52 = arith.extui %51 : i1 to i32
    %c0_i32_34 = arith.constant 0 : i32
    %53 = arith.cmpi ne, %52, %c0_i32_34 : i32
    scf.if %53 {
      %c0_35 = arith.constant 0 : index
      %c0_36 = arith.constant 0 : index
      %54 = vector.load %arg9[%c0_35, %c0_36] : memref<128x1xf32, #tpu.memory_space<vmem>>, vector<128x1xf32>
      %cst_37 = arith.constant 9.99999997E-7 : f32
      %55 = vector.broadcast %cst_37 : f32 to vector<128x1xf32>
      %56 = arith.cmpf olt, %54, %55 : vector<128x1xf32>
      %cst_38 = arith.constant 1.000000e+00 : f32
      %57 = vector.broadcast %cst_38 : f32 to vector<128x1xf32>
      %58 = arith.select %56, %57, %54 : vector<128x1xi1>, vector<128x1xf32>
      %c0_39 = arith.constant 0 : index
      %c0_40 = arith.constant 0 : index
      %59 = vector.load %arg7[%c0_39, %c0_40] : memref<128x1xf32, #tpu.memory_space<vmem>>, vector<128x1xf32>
      %c0_41 = arith.constant 0 : index
      %c0_42 = arith.constant 0 : index
      %60 = vector.load %arg8[%c0_41, %c0_42] : memref<128x1xf32, #tpu.memory_space<vmem>>, vector<128x1xf32>
      %61 = math.log %60 : vector<128x1xf32>
      %62 = arith.addf %59, %61 : vector<128x1xf32>
      %c0_43 = arith.constant 0 : index
      %c0_44 = arith.constant 0 : index
      %63 = vector.load %arg10[%c0_43, %c0_44] : memref<128x1xf32, #tpu.memory_space<vmem>>, vector<128x1xf32>
      %64 = arith.mulf %54, %62 : vector<128x1xf32>
      %65 = arith.subf %63, %64 : vector<128x1xf32>
      %66 = arith.divf %65, %58 : vector<128x1xf32>
      %c0_45 = arith.constant 0 : index
      %c0_46 = arith.constant 0 : index
      %67 = vector.load %arg6[%c0_45, %c0_46] : memref<128x1xf32, #tpu.memory_space<vmem>>, vector<128x1xf32>
      tpu.vector_store %arg6[%c0_45, %c0_46], %66 {strides = array<i32>} : memref<128x1xf32, #tpu.memory_space<vmem>>, vector<128x1xf32>,
    } else {
    }
    return
  }
  func.func @transform_0(%arg0: i32, %arg1: i32) -> (i32, i32) {
    %c0_i32 = arith.constant 0 : i32
    %c0_i32_0 = arith.constant 0 : i32
    return %arg0, %c0_i32 : i32, i32
  }
  func.func @transform_1(%arg0: i32, %arg1: i32) -> (i32, i32) {
    %c0_i32 = arith.constant 0 : i32
    %c0_i32_0 = arith.constant 0 : i32
    return %c0_i32, %arg1 : i32, i32
  }
  func.func @transform_2(%arg0: i32, %arg1: i32) -> (i32, i32) {
    %c0_i32 = arith.constant 0 : i32
    %c0_i32_0 = arith.constant 0 : i32
    return %arg0, %c0_i32 : i32, i32
  }
  func.func @transform_3(%arg0: i32, %arg1: i32) -> (i32, i32) {
    %c0_i32 = arith.constant 0 : i32
    %c0_i32_0 = arith.constant 0 : i32
    return %c0_i32, %arg1 : i32, i32
  }
  func.func @transform_4(%arg0: i32, %arg1: i32) -> (i32, i32) {
    %c0_i32 = arith.constant 0 : i32
    %c0_i32_0 = arith.constant 0 : i32
    return %arg0, %c0_i32 : i32, i32
  }
}

</mosaic_0001>

<bundles_post_ra>
// kernel: tpu_custom_call.1
= control target key start
LH: loop header
LB: loop body
LE: loop exit
PB: predicated region body
PF: predicated region fallthrough
CT: control target
= control target key end

     0   :  { %9 = vsyncpa [#allocation7], 0  ;;  %s1870_s15 = smov [#allocation6]   ;;  %s3127_s0 = inlined_call_operand.vmem [shape: f32[128,128], index: 0, kind: input, shape index: {}]   ;;  %s3128_s1 = inlined_call_operand.hbm [shape: f32[128,128], index: 1, kind: input, shape index: {}]   ;;  %s3129_s2 = inlined_call_operand.vmem [shape: s32[128,1], index: 2, kind: input, shape index: {}]   ;;  %s3130_s3 = inlined_call_operand.vmem [shape: s32[1,128], index: 3, kind: input, shape index: {}]   ;;  %s3131_s4 = inlined_call_operand.vmem [shape: f32[128,1], index: 4, kind: output, shape index: {}]  }
   0x1   :  { %s17_s16 = sshll.u32 %s1870_s15, 4  ;;  %s1846_s19 = scalar_lea.hbm %s3128_s1, 2048  ;;  %s18_s16 = int_to_ptr.vmem [resolvable:$true] %s17_s16 }
   0x2   :  { %p1847_p0 = scmp.ne.s32.totalorder %s3128_s1, %s1846_s19  ;;  %p1850_p1 = scmp.lt.u32.totalorder %s1846_s19, %s3128_s1 }
   0x4   :  { %p1852_p2 = pnand %p1850_p1, %p1847_p0 }
   0x6   :  { %1855 = shalt.err (!%p1852_p2)
}
   0x7   :  { %s1856_s24 = scalar_lea.vmem %s18_s16, 2048  ;;  %p1861_p4 = scmp.lt.s32.totalorder %s18_s16, %s18_s16 }
   0x8   :  { %p1857_p3 = scmp.ne.s32.totalorder %s18_s16, %s1856_s24  ;;  %p1862_p5 = scmp.lt.s32.totalorder %s1856_s24, %s1856_s24 }
   0xa   :  { %p1863_p6 = por %p1862_p5, %p1861_p4 }
   0xc   :  { %p1864_p7 = pnand %p1863_p6, %p1857_p3 }
   0xe   :  { %1867 = shalt.err (!%p1864_p7)
}
   0xf   :  { %s1871_s25 = smov 128   ;;  %s1872_s26 = smov 8  }
  0x10   :  { %23 = dma.hbm_to_vmem [thread:$0]  %s3128_s1, 2048, %s18_s16, [#allocation7], %s1871_s25, %s1871_s25, %s1872_s26  }
  0x11   :  { %1868 = dma.done.wait [#allocation7], 2048  }
  0x12   :  { %1869 = vsyncadd [#allocation7], 4294965248  ;;  %v1873_v0 = vmov 0   ;;  %v116_v1 = vld [vmem:[#allocation6] sm:$0xff]  ;;  %v117_v2 = vld [vmem:[#allocation6 + $0x8] sm:$0xff]  ;;  %v935_v57 = vlaneseq  ;;  %v3132_v62 = vmov 0.0  }
  0x13   :  { %1684 = vset.pattern.permute.xlu0 %v1873_v0  ;;  %1685 = vset.pattern.permute.xlu1 %v1873_v0  ;;  %v118_v3 = vld [vmem:[#allocation6 + $0x10] sm:$0xff]  ;;  %v1630_v4 = vpack.c.bf16 %v117_v2, %v116_v1  ;;  %v119_v5 = vld [vmem:[#allocation6 + $0x18] sm:$0xff]  ;;  %v120_v7 = vld [vmem:[#allocation6 + $0x20] sm:$0xff] }
  0x14   :  { %v1634_v6 = vpack.c.bf16 %v119_v5, %v118_v3  ;;  %v121_v8 = vld [vmem:[#allocation6 + $0x28] sm:$0xff]  ;;  %v100_v10 = vld [vmem:[%s3127_s0] sm:$0xff]  ;;  %v122_v12 = vld [vmem:[#allocation6 + $0x30] sm:$0xff]  ;;  %v2009_v58 = vshrl.u32 %v935_v57, 7  ;;  %v2014_v60 = vand.u32 127, %v935_v57 }
  0x15   :  { %1631 = vmatprep.subr.bf16.mxu0 %v1630_v4  ;;  %1662 = vmatprep.subr.bf16.mxu1 %v1630_v4  ;;  %v1638_v9 = vpack.c.bf16 %v121_v8, %v120_v7  ;;  %v108_v11 = vld [vmem:[%s3127_s0 + $0x40] sm:$0xff]  ;;  %v123_v13 = vld [vmem:[#allocation6 + $0x38] sm:$0xff]  ;;  %v125_v16 = vld [vmem:[#allocation6 + $0x48] sm:$0xff] }
  0x16   :  { %1633 = vmatpush3.bf16.msra.mxu0 %v1630_v4  ;;  %1670 = vmatpush3.bf16.msra.mxu1 %v1630_v4  ;;  %v1642_v14 = vpack.c.bf16 %v123_v13, %v122_v12  ;;  %v124_v15 = vld [vmem:[#allocation6 + $0x40] sm:$0xff]  ;;  %v279_v18 = vld [vmem:[%s3129_s2 + $0x10] sm:$0xff]  ;;  %v278_v19 = vld [vmem:[%s3129_s2 + $0x8] sm:$0xff]  ;;  %v2012_v59 = vadd.s32 8, %v2009_v58  ;;  %v2019_v61 = vadd.s32 24, %v2009_v58  ;;  %vm973_vm2 = vcmp.eq.s32.totalorder %v2009_v58, %v2014_v60 }
  0x17   :  { %1635 = vmatprep.subr.bf16.mxu0 %v1634_v6  ;;  %1663 = vmatprep.subr.bf16.mxu1 %v1634_v6  ;;  %v277_v17 = vld [vmem:[%s3129_s2] sm:$0xff]  ;;  %v1646_v20 = vpack.c.bf16 %v125_v16, %v124_v15  ;;  %v126_v21 = vld [vmem:[#allocation6 + $0x50] sm:$0xff]  ;;  %v127_v22 = vld [vmem:[#allocation6 + $0x58] sm:$0xff]  ;;  %v2030_v0 = vadd.s32 16, %v2009_v58  ;;  %v1037_v2 = vsel %vm973_vm2, 1.0, %v3132_v62 }
  0x18   :  { %1606 = vmatprep.mubr.f32.mxu0 %v100_v10  ;;  %1618 = vmatprep.mubr.f32.mxu1 %v108_v11  ;;  %v280_v23 = vld [vmem:[%s3129_s2 + $0x18] sm:$0xff]  ;;  %v281_v24 = vld [vmem:[%s3129_s2 + $0x20] sm:$0xff]  ;;  %v1650_v25 = vpack.c.bf16 %v127_v22, %v126_v21  ;;  %v129_v27 = vld [vmem:[#allocation6 + $0x68] sm:$0xff]  ;;  %vm974_vm0 = vcmp.eq.s32.totalorder %v2012_v59, %v2014_v60  ;;  %vm976_vm1 = vcmp.eq.s32.totalorder %v2019_v61, %v2014_v60 }
  0x19   :  { %295 = vperm.xlu0 %1684, %v277_v17   ;;  %301 = vperm.xlu1 %1685, %v279_v18   ;;  %v128_v26 = vld [vmem:[#allocation6 + $0x60] sm:$0xff]  ;;  %v282_v28 = vld [vmem:[%s3129_s2 + $0x28] sm:$0xff]  ;;  %v283_v29 = vld [vmem:[%s3129_s2 + $0x30] sm:$0xff]  ;;  %v1038_v63 = vsel %vm974_vm0, 1.0, %v3132_v62  ;;  %v1040_v1 = vsel %vm976_vm1, 1.0, %v3132_v62  ;;  %vm975_vm3 = vcmp.eq.s32.totalorder %v2030_v0, %v2014_v60 }
  0x1a   :  { %1637 = vmatpush3.bf16.msra.mxu0 %v1634_v6  ;;  %1671 = vmatpush3.bf16.msra.mxu1 %v1634_v6  ;;  %v1654_v30 = vpack.c.bf16 %v129_v27, %v128_v26  ;;  %v130_v31 = vld [vmem:[#allocation6 + $0x70] sm:$0xff]  ;;  %v131_v32 = vld [vmem:[#allocation6 + $0x78] sm:$0xff]  ;;  %v285_v34 = vld [vmem:[%s3129_s2 + $0x40] sm:$0xff]  ;;  %v1039_v3 = vsel %vm975_vm3, 1.0, %v3132_v62 }
  0x1b   :  { %1639 = vmatprep.subr.bf16.mxu0 %v1638_v9  ;;  %1664 = vmatprep.subr.bf16.mxu1 %v1638_v9  ;;  %v284_v33 = vld [vmem:[%s3129_s2 + $0x38] sm:$0xff]  ;;  %v1658_v35 = vpack.c.bf16 %v131_v32, %v130_v31  ;;  %v286_v36 = vld [vmem:[%s3129_s2 + $0x48] sm:$0xff]  ;;  %v287_v37 = vld [vmem:[%s3129_s2 + $0x50] sm:$0xff] }
  0x1c   :  { %v288_v38 = vld [vmem:[%s3129_s2 + $0x58] sm:$0xff]  ;;  %v101_v39 = vld [vmem:[%s3127_s0 + $0x8] sm:$0xff]  ;;  %v102_v41 = vld [vmem:[%s3127_s0 + $0x10] sm:$0xff] }
  0x1d   :  { %298 = vperm.xlu0 %1684, %v278_v19   ;;  %304 = vperm.xlu1 %1685, %v280_v23   ;;  %v109_v40 = vld [vmem:[%s3127_s0 + $0x48] sm:$0xff]  ;;  %v110_v42 = vld [vmem:[%s3127_s0 + $0x50] sm:$0xff]  ;;  %v289_v43 = vld [vmem:[%s3129_s2 + $0x60] sm:$0xff] }
  0x1e   :  { %1641 = vmatpush3.bf16.msra.mxu0 %v1638_v9  ;;  %1672 = vmatpush3.bf16.msra.mxu1 %v1638_v9  ;;  %v290_v44 = vld [vmem:[%s3129_s2 + $0x68] sm:$0xff]  ;;  %v103_v45 = vld [vmem:[%s3127_s0 + $0x18] sm:$0xff]  ;;  %v104_v47 = vld [vmem:[%s3127_s0 + $0x20] sm:$0xff] }
  0x1f   :  { %1643 = vmatprep.subr.bf16.mxu0 %v1642_v14  ;;  %1665 = vmatprep.subr.bf16.mxu1 %v1642_v14  ;;  %v111_v46 = vld [vmem:[%s3127_s0 + $0x58] sm:$0xff]  ;;  %v112_v48 = vld [vmem:[%s3127_s0 + $0x60] sm:$0xff]  ;;  %v291_v49 = vld [vmem:[%s3129_s2 + $0x70] sm:$0xff] }
  0x20   :  { %v292_v50 = vld [vmem:[%s3129_s2 + $0x78] sm:$0xff]  ;;  %v105_v51 = vld [vmem:[%s3127_s0 + $0x28] sm:$0xff]  ;;  %v106_v53 = vld [vmem:[%s3127_s0 + $0x30] sm:$0xff] }
  0x21   :  { %307 = vperm.xlu0 %1684, %v281_v24   ;;  %310 = vperm.xlu1 %1685, %v282_v28   ;;  %v113_v52 = vld [vmem:[%s3127_s0 + $0x68] sm:$0xff]  ;;  %v114_v54 = vld [vmem:[%s3127_s0 + $0x70] sm:$0xff]  ;;  %v107_v55 = vld [vmem:[%s3127_s0 + $0x38] sm:$0xff] }
  0x22   :  { %1645 = vmatpush3.bf16.msra.mxu0 %v1642_v14  ;;  %1673 = vmatpush3.bf16.msra.mxu1 %v1642_v14  ;;  %v115_v56 = vld [vmem:[%s3127_s0 + $0x78] sm:$0xff]  ;;  %v2049_v4 = vld [vmem:[%s3130_s3] ss:$0 sm:$0xff] }
  0x23   :  { %1647 = vmatprep.subr.bf16.mxu0 %v1646_v20  ;;  %1666 = vmatprep.subr.bf16.mxu1 %v1646_v20 }
  0x25   :  { %313 = vperm.xlu0 %1684, %v283_v29   ;;  %316 = vperm.xlu1 %1685, %v284_v33  }
  0x26   :  { %1649 = vmatpush3.bf16.msra.mxu0 %v1646_v20  ;;  %1674 = vmatpush3.bf16.msra.mxu1 %v1646_v20 }
  0x27   :  { %1651 = vmatprep.subr.bf16.mxu0 %v1650_v25  ;;  %1667 = vmatprep.subr.bf16.mxu1 %v1650_v25 }
  0x29   :  { %319 = vperm.xlu0 %1684, %v285_v34   ;;  %322 = vperm.xlu1 %1685, %v286_v36  }
  0x2a   :  { %1653 = vmatpush3.bf16.msra.mxu0 %v1650_v25  ;;  %1675 = vmatpush3.bf16.msra.mxu1 %v1650_v25 }
  0x2b   :  { %1655 = vmatprep.subr.bf16.mxu0 %v1654_v30  ;;  %1668 = vmatprep.subr.bf16.mxu1 %v1654_v30 }
  0x2d   :  { %325 = vperm.xlu0 %1684, %v287_v37   ;;  %328 = vperm.xlu1 %1685, %v288_v38   ;;  %v1875_v37 = vmov -inf  }
  0x2e   :  { %1657 = vmatpush3.bf16.msra.mxu0 %v1654_v30  ;;  %1676 = vmatpush3.bf16.msra.mxu1 %v1654_v30 }
  0x2f   :  { %1659 = vmatprep.subr.bf16.mxu0 %v1658_v35  ;;  %1669 = vmatprep.subr.bf16.mxu1 %v1658_v35 }
  0x31   :  { %331 = vperm.xlu0 %1684, %v289_v43   ;;  %334 = vperm.xlu1 %1685, %v290_v44  }
  0x32   :  { %1661 = vmatpush3.bf16.msra.mxu0 %v1658_v35  ;;  %1677 = vmatpush3.bf16.msra.mxu1 %v1658_v35 }
  0x35   :  { %1607 = vmatmul.mubr.f32.vlgmr.msra.gmra.mrb[0].mxu0 %v101_v39  ;;  %1619 = vmatmul.mubr.f32.vlgmr.msra.gmra.mrb[0].mxu1 %v109_v40 }
  0x36   :  { %1609 = vmatprep.mubr.f32.mxu0 %v102_v41  ;;  %1621 = vmatprep.mubr.f32.mxu1 %v110_v42 }
  0x37   :  { %337 = vperm.xlu0 %1684, %v291_v49   ;;  %340 = vperm.xlu1 %1685, %v292_v50  }
  0x39   :  { %1610 = vmatmul.mubr.f32.gmra.mrb[2].mxu0 %v103_v45  ;;  %1622 = vmatmul.mubr.f32.gmra.mrb[2].mxu1 %v111_v46  ;;  %v2264_v46 = vadd.s32 72, %v2009_v58 }
  0x3a   :  { %1612 = vmatprep.mubr.f32.mxu0 %v104_v47  ;;  %1624 = vmatprep.mubr.f32.mxu1 %v112_v48  ;;  %v2267_v47 = vadd.s32 64, %v2009_v58 }
  0x3d   :  { %1613 = vmatmul.mubr.f32.gmra.mrb[4].mxu0 %v105_v51  ;;  %1625 = vmatmul.mubr.f32.gmra.mrb[4].mxu1 %v113_v52 }
  0x3e   :  { %1615 = vmatprep.mubr.f32.mxu0 %v106_v53  ;;  %1627 = vmatprep.mubr.f32.mxu1 %v114_v54 }
  0x41   :  { %1616 = vmatmul.mubr.f32.gmra.mrb[6].mxu0 %v107_v55  ;;  %1628 = vmatmul.mubr.f32.gmra.mrb[6].mxu1 %v115_v56 }
  0x56   :  { %1055 = vadd.xlane.f32.xlu0 %v1038_v63 }
  0x5a   :  { %1059 = vadd.xlane.f32.xlu0 %v1040_v1  ;;  %v2308_v1 = vadd.s32 80, %v2009_v58 }
  0x5b   :  { %1053 = vadd.xlane.f32.xlu1 %v1037_v2 }
  0x5f   :  { %1057 = vadd.xlane.f32.xlu1 %v1039_v3 }
  0x98   :  { %v296_v5 = vpop.permute.xlu0 %295  ;;  %v302_v7 = vpop.permute.xlu1 %301 }
  0x99   :  { %vm346_vm4 = vcmp.eq.s32.totalorder %v296_v5, %v2049_v4  ;;  %vm348_vm5 = vcmp.eq.s32.totalorder %v302_v7, %v2049_v4  ;;  %v2325_v5 = vadd.s32 88, %v2009_v58 }
  0x9a   :  { %v2053_v6 = vsel %vm346_vm4, 1.0, %v3132_v62  ;;  %v2058_v9 = vsel %vm348_vm5, 1.0, %v3132_v62 }
  0x9b   :  { %763 = vadd.xlane.f32.xlu1 %v2053_v6 }
  0x9c   :  { %v299_v8 = vpop.permute.xlu0 %298  ;;  %v305_v11 = vpop.permute.xlu1 %304 }
  0x9d   :  { %vm347_vm6 = vcmp.eq.s32.totalorder %v299_v8, %v2049_v4  ;;  %vm349_vm7 = vcmp.eq.s32.totalorder %v305_v11, %v2049_v4  ;;  %v2337_v8 = vadd.s32 32, %v2009_v58 }
  0x9e   :  { %v2062_v10 = vsel %vm347_vm6, 1.0, %v3132_v62  ;;  %v2068_v13 = vsel %vm349_vm7, 1.0, %v3132_v62 }
  0x9f   :  { %767 = vadd.xlane.f32.xlu1 %v2058_v9  ;;  %765 = vadd.xlane.f32.xlu0 %v2062_v10 }
  0xa0   :  { %v308_v12 = vpop.permute.xlu0 %307  ;;  %v311_v15 = vpop.permute.xlu1 %310 }
  0xa1   :  { %vm350_vm8 = vcmp.eq.s32.totalorder %v308_v12, %v2049_v4  ;;  %vm351_vm9 = vcmp.eq.s32.totalorder %v311_v15, %v2049_v4  ;;  %v2342_v12 = vadd.s32 96, %v2009_v58 }
  0xa2   :  { %v2072_v14 = vsel %vm350_vm8, 1.0, %v3132_v62  ;;  %v2078_v17 = vsel %vm351_vm9, 1.0, %v3132_v62  ;;  %vm35_vm8 = vcmask 7168   ;;  %vm982_vm9 = vcmp.eq.s32.totalorder %v2264_v46, %v2014_v60 }
  0xa3   :  { %769 = vadd.xlane.f32.xlu0 %v2068_v13  ;;  %771 = vadd.xlane.f32.xlu1 %v2072_v14  ;;  %68 = vst.msk [vmem:[#allocation4] sm:$0xff] %vm35_vm8, %v3132_v62  ;;  %52 = vst.msk [vmem:[#allocation3] sm:$0xff] %vm35_vm8, %v3132_v62 }
  0xa4   :  { %v314_v16 = vpop.permute.xlu0 %313  ;;  %v317_v19 = vpop.permute.xlu1 %316  ;;  %53 = vst.msk [vmem:[#allocation3 + $0x8] sm:$0xff] %vm35_vm8, %v3132_v62  ;;  %54 = vst.msk [vmem:[#allocation3 + $0x10] sm:$0xff] %vm35_vm8, %v3132_v62 }
  0xa5   :  { %vm352_vm10 = vcmp.eq.s32.totalorder %v314_v16, %v2049_v4  ;;  %vm353_vm11 = vcmp.eq.s32.totalorder %v317_v19, %v2049_v4  ;;  %55 = vst.msk [vmem:[#allocation3 + $0x18] sm:$0xff] %vm35_vm8, %v3132_v62  ;;  %56 = vst.msk [vmem:[#allocation3 + $0x20] sm:$0xff] %vm35_vm8, %v3132_v62 }
  0xa6   :  { %v2082_v18 = vsel %vm352_vm10, 1.0, %v3132_v62  ;;  %v2088_v21 = vsel %vm353_vm11, 1.0, %v3132_v62  ;;  %57 = vst.msk [vmem:[#allocation3 + $0x28] sm:$0xff] %vm35_vm8, %v3132_v62  ;;  %58 = vst.msk [vmem:[#allocation3 + $0x30] sm:$0xff] %vm35_vm8, %v3132_v62  ;;  %vm981_vm10 = vcmp.eq.s32.totalorder %v2267_v47, %v2014_v60 }
  0xa7   :  { %773 = vadd.xlane.f32.xlu0 %v2078_v17  ;;  %775 = vadd.xlane.f32.xlu1 %v2082_v18  ;;  %59 = vst.msk [vmem:[#allocation3 + $0x38] sm:$0xff] %vm35_vm8, %v3132_v62  ;;  %60 = vst.msk [vmem:[#allocation3 + $0x40] sm:$0xff] %vm35_vm8, %v3132_v62 }
  0xa8   :  { %v320_v20 = vpop.permute.xlu0 %319  ;;  %v323_v23 = vpop.permute.xlu1 %322  ;;  %61 = vst.msk [vmem:[#allocation3 + $0x48] sm:$0xff] %vm35_vm8, %v3132_v62  ;;  %62 = vst.msk [vmem:[#allocation3 + $0x50] sm:$0xff] %vm35_vm8, %v3132_v62 }
  0xa9   :  { %vm354_vm12 = vcmp.eq.s32.totalorder %v320_v20, %v2049_v4  ;;  %vm355_vm13 = vcmp.eq.s32.totalorder %v323_v23, %v2049_v4  ;;  %63 = vst.msk [vmem:[#allocation3 + $0x58] sm:$0xff] %vm35_vm8, %v3132_v62  ;;  %64 = vst.msk [vmem:[#allocation3 + $0x60] sm:$0xff] %vm35_vm8, %v3132_v62  ;;  %v2361_v23 = vadd.s32 40, %v2009_v58 }
  0xaa   :  { %v2092_v22 = vsel %vm354_vm12, 1.0, %v3132_v62  ;;  %v2098_v25 = vsel %vm355_vm13, 1.0, %v3132_v62  ;;  %65 = vst.msk [vmem:[#allocation3 + $0x68] sm:$0xff] %vm35_vm8, %v3132_v62  ;;  %66 = vst.msk [vmem:[#allocation3 + $0x70] sm:$0xff] %vm35_vm8, %v3132_v62  ;;  %v747_v15 = vld [vmem:[#allocation4] sm:$0xff] }
  0xab   :  { %777 = vadd.xlane.f32.xlu0 %v2088_v21  ;;  %779 = vadd.xlane.f32.xlu1 %v2092_v22  ;;  %67 = vst.msk [vmem:[#allocation3 + $0x78] sm:$0xff] %vm35_vm8, %v3132_v62  ;;  %69 = vst.msk [vmem:[#allocation4 + $0x8] sm:$0xff] %vm35_vm8, %v3132_v62  ;;  %vm978_vm11 = vcmp.eq.s32.totalorder %v2361_v23, %v2014_v60  ;;  %v1046_v23 = vsel %vm982_vm9, 1.0, %v3132_v62 }
  0xac   :  { %v326_v24 = vpop.permute.xlu0 %325  ;;  %v329_v27 = vpop.permute.xlu1 %328  ;;  %70 = vst.msk [vmem:[#allocation4 + $0x10] sm:$0xff] %vm35_vm8, %v3132_v62  ;;  %71 = vst.msk [vmem:[#allocation4 + $0x18] sm:$0xff] %vm35_vm8, %v3132_v62 }
  0xad   :  { %vm356_vm14 = vcmp.eq.s32.totalorder %v326_v24, %v2049_v4  ;;  %vm357_vm15 = vcmp.eq.s32.totalorder %v329_v27, %v2049_v4  ;;  %72 = vst.msk [vmem:[#allocation4 + $0x20] sm:$0xff] %vm35_vm8, %v3132_v62  ;;  %73 = vst.msk [vmem:[#allocation4 + $0x28] sm:$0xff] %vm35_vm8, %v3132_v62 }
  0xae   :  { %v2102_v26 = vsel %vm356_vm14, 1.0, %v3132_v62  ;;  %v2108_v28 = vsel %vm357_vm15, 1.0, %v3132_v62  ;;  %74 = vst.msk [vmem:[#allocation4 + $0x30] sm:$0xff] %vm35_vm8, %v3132_v62  ;;  %75 = vst.msk [vmem:[#allocation4 + $0x38] sm:$0xff] %vm35_vm8, %v3132_v62 }
  0xaf   :  { %781 = vadd.xlane.f32.xlu0 %v2098_v25  ;;  %783 = vadd.xlane.f32.xlu1 %v2102_v26  ;;  %76 = vst.msk [vmem:[#allocation4 + $0x40] sm:$0xff] %vm35_vm8, %v3132_v62  ;;  %77 = vst.msk [vmem:[#allocation4 + $0x48] sm:$0xff] %vm35_vm8, %v3132_v62 }
  0xb0   :  { %v332_v29 = vpop.permute.xlu0 %331  ;;  %v335_v30 = vpop.permute.xlu1 %334  ;;  %78 = vst.msk [vmem:[#allocation4 + $0x50] sm:$0xff] %vm35_vm8, %v3132_v62  ;;  %79 = vst.msk [vmem:[#allocation4 + $0x58] sm:$0xff] %vm35_vm8, %v3132_v62 }
  0xb1   :  { %vm358_vm4 = vcmp.eq.s32.totalorder %v332_v29, %v2049_v4  ;;  %vm359_vm5 = vcmp.eq.s32.totalorder %v335_v30, %v2049_v4  ;;  %80 = vst.msk [vmem:[#allocation4 + $0x60] sm:$0xff] %vm35_vm8, %v3132_v62  ;;  %81 = vst.msk [vmem:[#allocation4 + $0x68] sm:$0xff] %vm35_vm8, %v3132_v62 }
  0xb2   :  { %v2113_v31 = vsel %vm358_vm4, 1.0, %v3132_v62  ;;  %v2118_v32 = vsel %vm359_vm5, 1.0, %v3132_v62  ;;  %82 = vst.msk [vmem:[#allocation4 + $0x70] sm:$0xff] %vm35_vm8, %v3132_v62  ;;  %83 = vst.msk [vmem:[#allocation4 + $0x78] sm:$0xff] %vm35_vm8, %v3132_v62  ;;  %v748_v30 = vld [vmem:[#allocation4 + $0x8] sm:$0xff] }
  0xb3   :  { %785 = vadd.xlane.f32.xlu0 %v2108_v28  ;;  %787 = vadd.xlane.f32.xlu1 %v2113_v31  ;;  %84 = vst.msk [vmem:[#allocation5] sm:$0xff] %vm35_vm8, %v3132_v62  ;;  %85 = vst.msk [vmem:[#allocation5 + $0x8] sm:$0xff] %vm35_vm8, %v3132_v62  ;;  %v749_v29 = vld [vmem:[#allocation4 + $0x10] sm:$0xff] }
  0xb4   :  { %86 = vst.msk [vmem:[#allocation5 + $0x10] sm:$0xff] %vm35_vm8, %v3132_v62  ;;  %87 = vst.msk [vmem:[#allocation5 + $0x18] sm:$0xff] %vm35_vm8, %v3132_v62 }
  0xb5   :  { %88 = vst.msk [vmem:[#allocation5 + $0x20] sm:$0xff] %vm35_vm8, %v3132_v62  ;;  %89 = vst.msk [vmem:[#allocation5 + $0x28] sm:$0xff] %vm35_vm8, %v3132_v62 }
  0xb6   :  { %v338_v33 = vpop.permute.xlu0 %337  ;;  %v341_v34 = vpop.permute.xlu1 %340  ;;  %90 = vst.msk [vmem:[#allocation5 + $0x30] sm:$0xff] %vm35_vm8, %v3132_v62  ;;  %91 = vst.msk [vmem:[#allocation5 + $0x38] sm:$0xff] %vm35_vm8, %v3132_v62 }
  0xb7   :  { %789 = vadd.xlane.f32.xlu0 %v2118_v32  ;;  %vm360_vm6 = vcmp.eq.s32.totalorder %v338_v33, %v2049_v4  ;;  %vm361_vm7 = vcmp.eq.s32.totalorder %v341_v34, %v2049_v4  ;;  %92 = vst.msk [vmem:[#allocation5 + $0x40] sm:$0xff] %vm35_vm8, %v3132_v62  ;;  %93 = vst.msk [vmem:[#allocation5 + $0x48] sm:$0xff] %vm35_vm8, %v3132_v62 }
  0xb8   :  { %v2123_v35 = vsel %vm360_vm6, 1.0, %v3132_v62  ;;  %v2128_v36 = vsel %vm361_vm7, 1.0, %v3132_v62  ;;  %94 = vst.msk [vmem:[#allocation5 + $0x50] sm:$0xff] %vm35_vm8, %v3132_v62  ;;  %95 = vst.msk [vmem:[#allocation5 + $0x58] sm:$0xff] %vm35_vm8, %v3132_v62 }
  0xb9   :  { %791 = vadd.xlane.f32.xlu1 %v2123_v35  ;;  %96 = vst.msk [vmem:[#allocation5 + $0x60] sm:$0xff] %vm35_vm8, %v3132_v62  ;;  %97 = vst.msk [vmem:[#allocation5 + $0x68] sm:$0xff] %vm35_vm8, %v3132_v62 }
  0xba   :  { %98 = vst.msk [vmem:[#allocation5 + $0x70] sm:$0xff] %vm35_vm8, %v3132_v62  ;;  %99 = vst.msk [vmem:[#allocation5 + $0x78] sm:$0xff] %vm35_vm8, %v3132_v62 }
  0xbb   :  { %793 = vadd.xlane.f32.xlu0 %v2128_v36  ;;  %45 = vst.msk [vmem:[#allocation2 + $0x48] sm:$0xff] %vm35_vm8, %v1875_v37  ;;  %36 = vst.msk [vmem:[#allocation2] sm:$0xff] %vm35_vm8, %v1875_v37 }
  0xbc   :  { %37 = vst.msk [vmem:[#allocation2 + $0x8] sm:$0xff] %vm35_vm8, %v1875_v37  ;;  %38 = vst.msk [vmem:[#allocation2 + $0x10] sm:$0xff] %vm35_vm8, %v1875_v37 }
  0xbd   :  { %39 = vst.msk [vmem:[#allocation2 + $0x18] sm:$0xff] %vm35_vm8, %v1875_v37  ;;  %40 = vst.msk [vmem:[#allocation2 + $0x20] sm:$0xff] %vm35_vm8, %v1875_v37 }
  0xbe   :  { %41 = vst.msk [vmem:[#allocation2 + $0x28] sm:$0xff] %vm35_vm8, %v1875_v37  ;;  %42 = vst.msk [vmem:[#allocation2 + $0x30] sm:$0xff] %vm35_vm8, %v1875_v37 }
  0xbf   :  { %43 = vst.msk [vmem:[#allocation2 + $0x38] sm:$0xff] %vm35_vm8, %v1875_v37  ;;  %44 = vst.msk [vmem:[#allocation2 + $0x40] sm:$0xff] %vm35_vm8, %v1875_v37 }
  0xc0   :  { %46 = vst.msk [vmem:[#allocation2 + $0x50] sm:$0xff] %vm35_vm8, %v1875_v37  ;;  %47 = vst.msk [vmem:[#allocation2 + $0x58] sm:$0xff] %vm35_vm8, %v1875_v37 }
  0xc1   :  { %48 = vst.msk [vmem:[#allocation2 + $0x60] sm:$0xff] %vm35_vm8, %v1875_v37  ;;  %49 = vst.msk [vmem:[#allocation2 + $0x68] sm:$0xff] %vm35_vm8, %v1875_v37 }
  0xc2   :  { %50 = vst.msk [vmem:[#allocation2 + $0x70] sm:$0xff] %vm35_vm8, %v1875_v37  ;;  %51 = vst.msk [vmem:[#allocation2 + $0x78] sm:$0xff] %vm35_vm8, %v1875_v37  ;;  %v2372_v37 = vadd.s32 104, %v2009_v58 }
  0xc4   :  { %vm986_vm12 = vcmp.eq.s32.totalorder %v2372_v37, %v2014_v60 }
  0xe3   :  { %v2331_v7 = vpop.xlane.xlu0 %1055 }
  0xe4   :  { %3182 = vst [vmem:[#allocation10_spill] sm:$0xff] %v2331_v7 }
  0xe7   :  { %v2351_v16 = vpop.xlane.xlu0 %1059 }
  0xe8   :  { %v2321_v4 = vpop.xlane.xlu1 %1053  ;;  %3184 = vst [vmem:[#allocation12_spill] sm:$0xff] %v2351_v16 }
  0xe9   :  { %3181 = vst [vmem:[#allocation9_spill] sm:$0xff] %v2321_v4 }
  0xec   :  { %v2339_v11 = vpop.xlane.xlu1 %1057 }
  0xed   :  { %3183 = vst [vmem:[#allocation11_spill] sm:$0xff] %v2339_v11 }
 0x108   :  { %v2243_v38 = vpop.f32.mrb[0].mxu0  ;;  %v2245_v39 = vpop.f32.mrb[0].mxu1 }
 0x109   :  { %428 = vmax.xlane.f32.xlu0 %v2245_v39  ;;  %v2248_v40 = vpop.f32.mrb[1].mxu1  ;;  %412 = vmax.xlane.f32.xlu1 %v2243_v38  ;;  %v2251_v41 = vpop.f32.mrb[1].mxu0  ;;  %v990_v50 = vsel %vm974_vm0, %v2243_v38, 0.0  ;;  %v998_v56 = vsel %vm982_vm9, %v2245_v39, 0.0  ;;  %vm983_vm0 = vcmp.eq.s32.totalorder %v2308_v1, %v2014_v60  ;;  %v844_v46 = vmul.f32 %v2243_v38, %v2062_v10  ;;  %v2477_v10 = vld [vmem:[#allocation2] sm:$0xff] }
 0x10a   :  { %v989_v51 = vsel %vm973_vm2, %v2251_v41, 0.0  ;;  %v997_v57 = vsel %vm981_vm10, %v2248_v40, 0.0  ;;  %vm984_vm2 = vcmp.eq.s32.totalorder %v2325_v5, %v2014_v60  ;;  %3190 = vst [vmem:[#allocation18_spill] sm:$0xff] %v2477_v10 }
 0x10c   :  { %v2253_v42 = vpop.f32.mrb[2].mxu0  ;;  %v2255_v43 = vpop.f32.mrb[2].mxu1 }
 0x10d   :  { %v2257_v44 = vpop.f32.mrb[3].mxu1  ;;  %426 = vmax.xlane.f32.xlu1 %v2248_v40  ;;  %410 = vmax.xlane.f32.xlu0 %v2251_v41  ;;  %v2261_v45 = vpop.f32.mrb[3].mxu0  ;;  %v992_v0 = vsel %vm976_vm1, %v2253_v42, 0.0  ;;  %v1000_v61 = vsel %vm984_vm2, %v2255_v43, 0.0  ;;  %vm977_vm1 = vcmp.eq.s32.totalorder %v2337_v8, %v2014_v60  ;;  %v846_v5 = vmul.f32 %v2253_v42, %v2068_v13 }
 0x10e   :  { %v991_v2 = vsel %vm975_vm3, %v2261_v45, 0.0  ;;  %v999_v3 = vsel %vm983_vm0, %v2257_v44, 0.0  ;;  %vm985_vm3 = vcmp.eq.s32.totalorder %v2342_v12, %v2014_v60 }
 0x110   :  { %v2269_v48 = vpop.f32.mrb[4].mxu0  ;;  %v2271_v49 = vpop.f32.mrb[4].mxu1 }
 0x111   :  { %v2281_v52 = vpop.f32.mrb[5].mxu1  ;;  %1007 = vadd.xlane.f32.xlu0 %v990_v50  ;;  %1005 = vadd.xlane.f32.xlu1 %v989_v51  ;;  %v2283_v53 = vpop.f32.mrb[5].mxu0 }
 0x112   :  { %v993_v19 = vsel %vm977_vm1, %v2283_v53, 0.0  ;;  %v1001_v27 = vsel %vm985_vm3, %v2281_v52, 0.0  ;;  %v847_v12 = vmul.f32 %v2072_v14, %v2283_v53 }
 0x114   :  { %v2289_v54 = vpop.f32.mrb[6].mxu0  ;;  %v2291_v55 = vpop.f32.mrb[6].mxu1 }
 0x115   :  { %v2301_v59 = vpop.f32.mrb[7].mxu1  ;;  %1023 = vadd.xlane.f32.xlu0 %v998_v56  ;;  %1021 = vadd.xlane.f32.xlu1 %v997_v57  ;;  %v2303_v63 = vpop.f32.mrb[7].mxu0  ;;  %v751_v56 = vld [vmem:[#allocation4 + $0x20] sm:$0xff]  ;;  %v750_v57 = vld [vmem:[#allocation4 + $0x18] sm:$0xff] }
 0x119   :  { %430 = vmax.xlane.f32.xlu1 %v2257_v44  ;;  %416 = vmax.xlane.f32.xlu0 %v2253_v42 }
 0x11d   :  { %432 = vmax.xlane.f32.xlu0 %v2255_v43  ;;  %1009 = vadd.xlane.f32.xlu1 %v991_v2  ;;  %v2375_v2 = vadd.s32 48, %v2009_v58 }
 0x11f   :  { %vm979_vm13 = vcmp.eq.s32.totalorder %v2375_v2, %v2014_v60 }
 0x121   :  { %414 = vmax.xlane.f32.xlu0 %v2261_v45  ;;  %1025 = vadd.xlane.f32.xlu1 %v999_v3  ;;  %v994_v3 = vsel %vm978_vm11, %v2269_v48, 0.0 }
 0x125   :  { %1011 = vadd.xlane.f32.xlu0 %v992_v0  ;;  %418 = vmax.xlane.f32.xlu1 %v2283_v53 }
 0x128   :  { %v764_v20 = vpop.xlane.xlu1 %763 }
 0x129   :  { %1027 = vadd.xlane.f32.xlu0 %v1000_v61  ;;  %434 = vmax.xlane.f32.xlu1 %v2281_v52  ;;  %v795_v24 = vadd.f32 %v764_v20, %v747_v15 }
 0x12b   :  { %811 = vst.msk [vmem:[#allocation4] sm:$0xff] %vm35_vm8, %v795_v24  ;;  %v753_v24 = vld [vmem:[#allocation4 + $0x30] sm:$0xff] }
 0x12c   :  { %v768_v33 = vpop.xlane.xlu1 %767  ;;  %v766_v34 = vpop.xlane.xlu0 %765 }
 0x12d   :  { %420 = vmax.xlane.f32.xlu0 %v2269_v48  ;;  %1013 = vadd.xlane.f32.xlu1 %v993_v19  ;;  %v797_v50 = vadd.f32 %v768_v33, %v749_v29  ;;  %v796_v51 = vadd.f32 %v766_v34, %v748_v30  ;;  %v2389_v29 = vadd.s32 112, %v2009_v58  ;;  %v1002_v33 = vsel %vm986_vm12, %v2271_v49, 0.0 }
 0x12f   :  { %813 = vst.msk [vmem:[#allocation4 + $0x10] sm:$0xff] %vm35_vm8, %v797_v50  ;;  %812 = vst.msk [vmem:[#allocation4 + $0x8] sm:$0xff] %vm35_vm8, %v796_v51  ;;  %vm987_vm14 = vcmp.eq.s32.totalorder %v2389_v29, %v2014_v60 }
 0x130   :  { %v772_v0 = vpop.xlane.xlu1 %771  ;;  %v770_v61 = vpop.xlane.xlu0 %769 }
 0x131   :  { %436 = vmax.xlane.f32.xlu0 %v2271_v49  ;;  %1029 = vadd.xlane.f32.xlu1 %v1001_v27  ;;  %v799_v15 = vadd.f32 %v772_v0, %v751_v56  ;;  %v798_v19 = vadd.f32 %v770_v61, %v750_v57  ;;  %v752_v27 = vld [vmem:[#allocation4 + $0x28] sm:$0xff]  ;;  %v755_v57 = vld [vmem:[#allocation4 + $0x40] sm:$0xff] }
 0x132   :  { %v1197_v20 = vld [vmem:[#allocation4] sm:$0xff] }
 0x133   :  { %v1213_v30 = vsub.f32 %v1197_v20, %v2321_v4  ;;  %815 = vst.msk [vmem:[#allocation4 + $0x20] sm:$0xff] %vm35_vm8, %v799_v15  ;;  %814 = vst.msk [vmem:[#allocation4 + $0x18] sm:$0xff] %vm35_vm8, %v798_v19  ;;  %v754_v15 = vld [vmem:[#allocation4 + $0x38] sm:$0xff] }
 0x134   :  { %v776_v34 = vpop.xlane.xlu1 %775  ;;  %v774_v50 = vpop.xlane.xlu0 %773 }
 0x135   :  { %1015 = vadd.xlane.f32.xlu0 %v994_v3  ;;  %422 = vmax.xlane.f32.xlu1 %v2303_v63  ;;  %1229 = vst.msk [vmem:[#allocation4] sm:$0xff] %vm35_vm8, %v1213_v30  ;;  %v801_v51 = vadd.f32 %v776_v34, %v753_v24  ;;  %v800_v56 = vadd.f32 %v774_v50, %v752_v27  ;;  %v995_v3 = vsel %vm979_vm13, %v2303_v63, 0.0  ;;  %v943_v30 = vadd.s32 56, %v2009_v58 }
 0x136   :  { %v1199_v0 = vld [vmem:[#allocation4 + $0x10] sm:$0xff]  ;;  %v1198_v61 = vld [vmem:[#allocation4 + $0x8] sm:$0xff]  ;;  %v1003_v50 = vsel %vm987_vm14, %v2301_v59, 0.0 }
 0x137   :  { %v1215_v19 = vsub.f32 %v1199_v0, %v2339_v11  ;;  %v1214_v20 = vsub.f32 %v1198_v61, %v2331_v7  ;;  %817 = vst.msk [vmem:[#allocation4 + $0x30] sm:$0xff] %vm35_vm8, %v801_v51  ;;  %816 = vst.msk [vmem:[#allocation4 + $0x28] sm:$0xff] %vm35_vm8, %v800_v56  ;;  %v757_v56 = vld [vmem:[#allocation4 + $0x50] sm:$0xff]  ;;  %v756_v0 = vld [vmem:[#allocation4 + $0x48] sm:$0xff]  ;;  %vm980_vm15 = vcmp.eq.s32.totalorder %v943_v30, %v2014_v60  ;;  %v1050_v30 = vsel %vm986_vm12, 1.0, %v3132_v62 }
 0x138   :  { %v780_v24 = vpop.xlane.xlu1 %779  ;;  %v778_v27 = vpop.xlane.xlu0 %777  ;;  %v2562_v7 = vld [vmem:[#allocation2 + $0x60] sm:$0xff] }
 0x139   :  { %1031 = vadd.xlane.f32.xlu0 %v1002_v33  ;;  %438 = vmax.xlane.f32.xlu1 %v2301_v59  ;;  %1231 = vst.msk [vmem:[#allocation4 + $0x10] sm:$0xff] %vm35_vm8, %v1215_v19  ;;  %1230 = vst.msk [vmem:[#allocation4 + $0x8] sm:$0xff] %vm35_vm8, %v1214_v20  ;;  %v803_v33 = vadd.f32 %v780_v24, %v755_v57  ;;  %v802_v34 = vadd.f32 %v778_v27, %v754_v15  ;;  %v951_v57 = vadd.s32 120, %v2009_v58  ;;  %v758_v24 = vld [vmem:[#allocation4 + $0x58] sm:$0xff] }
 0x13a   :  { %v1200_v51 = vld [vmem:[#allocation4 + $0x18] sm:$0xff]  ;;  %v996_v27 = vsel %vm980_vm15, %v2289_v54, 0.0  ;;  %3204 = vst [vmem:[#allocation32_spill] sm:$0xff] %v2562_v7 }
 0x13b   :  { %v1216_v61 = vsub.f32 %v1200_v51, %v2351_v16  ;;  %819 = vst.msk [vmem:[#allocation4 + $0x40] sm:$0xff] %vm35_vm8, %v803_v33  ;;  %818 = vst.msk [vmem:[#allocation4 + $0x38] sm:$0xff] %vm35_vm8, %v802_v34  ;;  %v759_v33 = vld [vmem:[#allocation4 + $0x60] sm:$0xff]  ;;  %vm988_vm4 = vcmp.eq.s32.totalorder %v951_v57, %v2014_v60  ;;  %v760_v51 = vld [vmem:[#allocation4 + $0x68] sm:$0xff] }
 0x13c   :  { %v782_v19 = vpop.xlane.xlu0 %781 }
 0x13d   :  { %424 = vmax.xlane.f32.xlu0 %v2289_v54  ;;  %1017 = vadd.xlane.f32.xlu1 %v995_v3  ;;  %v784_v3 = vpop.xlane.xlu1 %783  ;;  %1232 = vst.msk [vmem:[#allocation4 + $0x18] sm:$0xff] %vm35_vm8, %v1216_v61  ;;  %v804_v20 = vadd.f32 %v782_v19, %v756_v0  ;;  %v761_v0 = vld [vmem:[#allocation4 + $0x70] sm:$0xff] }
 0x13e   :  { %v805_v15 = vadd.f32 %v784_v3, %v757_v56  ;;  %v1004_v56 = vsel %vm988_vm4, %v2291_v55, 0.0 }
 0x13f   :  { %820 = vst.msk [vmem:[#allocation4 + $0x48] sm:$0xff] %vm35_vm8, %v804_v20 }
 0x140   :  { %821 = vst.msk [vmem:[#allocation4 + $0x50] sm:$0xff] %vm35_vm8, %v805_v15  ;;  %v786_v34 = vpop.xlane.xlu0 %785  ;;  %v1042_v15 = vsel %vm978_vm11, 1.0, %v3132_v62 }
 0x141   :  { %440 = vmax.xlane.f32.xlu0 %v2291_v55  ;;  %1033 = vadd.xlane.f32.xlu1 %v1003_v50  ;;  %v806_v50 = vadd.f32 %v786_v34, %v758_v24  ;;  %v788_v58 = vpop.xlane.xlu1 %787  ;;  %v762_v24 = vld [vmem:[#allocation4 + $0x78] sm:$0xff] }
 0x142   :  { %v807_v61 = vadd.f32 %v788_v58, %v759_v33  ;;  %v1048_v58 = vsel %vm984_vm2, 1.0, %v3132_v62 }
 0x143   :  { %822 = vst.msk [vmem:[#allocation4 + $0x58] sm:$0xff] %vm35_vm8, %v806_v50  ;;  %v1044_v50 = vsel %vm980_vm15, 1.0, %v3132_v62 }
 0x144   :  { %v790_v3 = vpop.xlane.xlu0 %789  ;;  %823 = vst.msk [vmem:[#allocation4 + $0x60] sm:$0xff] %vm35_vm8, %v807_v61  ;;  %v2465_v61 = vld [vmem:[#allocation2 + $0x48] sm:$0xff] }
 0x145   :  { %1019 = vadd.xlane.f32.xlu0 %v996_v27  ;;  %v808_v19 = vadd.f32 %v790_v3, %v760_v51  ;;  %v1052_v51 = vsel %vm988_vm4, 1.0, %v3132_v62  ;;  %3185 = vst [vmem:[#allocation13_spill] sm:$0xff] %v2465_v61  ;;  %v2538_v62 = vld [vmem:[#allocation2 + $0x10] sm:$0xff] }
 0x146   :  { %v792_v20 = vpop.xlane.xlu1 %791  ;;  %3200 = vst [vmem:[#allocation28_spill] sm:$0xff] %v2538_v62 }
 0x147   :  { %v809_v27 = vadd.f32 %v792_v20, %v761_v0  ;;  %824 = vst.msk [vmem:[#allocation4 + $0x68] sm:$0xff] %vm35_vm8, %v808_v19  ;;  %v2475_v19 = vld [vmem:[#allocation2 + $0x40] sm:$0xff] }
 0x148   :  { %v794_v33 = vpop.xlane.xlu0 %793  ;;  %3189 = vst [vmem:[#allocation17_spill] sm:$0xff] %v2475_v19 }
 0x149   :  { %1035 = vadd.xlane.f32.xlu0 %v1004_v56  ;;  %825 = vst.msk [vmem:[#allocation4 + $0x70] sm:$0xff] %vm35_vm8, %v809_v27  ;;  %v810_v34 = vadd.f32 %v794_v33, %v762_v24  ;;  %v2467_v56 = vld [vmem:[#allocation2 + $0x8] sm:$0xff] }
 0x14a   :  { %3186 = vst [vmem:[#allocation14_spill] sm:$0xff] %v2467_v56 }
 0x14b   :  { %826 = vst.msk [vmem:[#allocation4 + $0x78] sm:$0xff] %vm35_vm8, %v810_v34  ;;  %v2522_v34 = vld [vmem:[#allocation2 + $0x58] sm:$0xff] }
 0x14c   :  { %3198 = vst [vmem:[#allocation26_spill] sm:$0xff] %v2522_v34 }
 0x14d   :  { %1063 = vadd.xlane.f32.xlu0 %v1042_v15 }
 0x151   :  { %1067 = vadd.xlane.f32.xlu0 %v1044_v50  ;;  %v2555_v50 = vld [vmem:[#allocation2 + $0x20] sm:$0xff] }
 0x152   :  { %3203 = vst [vmem:[#allocation31_spill] sm:$0xff] %v2555_v50 }
 0x155   :  { %1071 = vadd.xlane.f32.xlu0 %v1046_v23 }
 0x159   :  { %1075 = vadd.xlane.f32.xlu0 %v1048_v58 }
 0x15d   :  { %1079 = vadd.xlane.f32.xlu0 %v1050_v30 }
 0x161   :  { %1083 = vadd.xlane.f32.xlu0 %v1052_v51 }
 0x165   :  { %861 = vadd.xlane.f32.xlu0 %v844_v46  ;;  %v2512_v46 = vld [vmem:[#allocation2 + $0x50] sm:$0xff] }
 0x166   :  { %3194 = vst [vmem:[#allocation22_spill] sm:$0xff] %v2512_v46 }
 0x169   :  { %865 = vadd.xlane.f32.xlu0 %v846_v5  ;;  %v2514_v5 = vld [vmem:[#allocation2 + $0x18] sm:$0xff] }
 0x16a   :  { %3195 = vst [vmem:[#allocation23_spill] sm:$0xff] %v2514_v5 }
 0x196   :  { %v429_v37 = vpop.xlane.xlu0 %428  ;;  %v413_v0 = vpop.xlane.xlu1 %412 }
 0x197   :  { %v2470_v3 = vmax.f32 %v2465_v61, %v429_v37  ;;  %v2473_v57 = vmax.f32 %v2467_v56, %v413_v0  ;;  %v2626_v56 = vld [vmem:[#allocation2 + $0x38] sm:$0xff] }
 0x198   :  { %3216 = vst [vmem:[#allocation44_spill] sm:$0xff] %v2626_v56 }
 0x199   :  { %3187 = vst [vmem:[#allocation15_spill] sm:$0xff] %v2470_v3  ;;  %3188 = vst [vmem:[#allocation16_spill] sm:$0xff] %v2473_v57  ;;  %553 = vperm.xlu1 %1685, %v2470_v3   ;;  %513 = vperm.xlu0 %1684, %v2473_v57  }
 0x19a   :  { %740 = vst.msk [vmem:[#allocation2 + $0x48] sm:$0xff] %vm35_vm8, %v2470_v3  ;;  %732 = vst.msk [vmem:[#allocation2 + $0x8] sm:$0xff] %vm35_vm8, %v2473_v57  ;;  %v427_v20 = vpop.xlane.xlu1 %426  ;;  %v411_v24 = vpop.xlane.xlu0 %410 }
 0x19b   :  { %v2490_v27 = vmax.f32 %v2475_v19, %v427_v20  ;;  %v2493_v33 = vmax.f32 %v2477_v10, %v411_v24 }
 0x19d   :  { %3191 = vst [vmem:[#allocation19_spill] sm:$0xff] %v2493_v33  ;;  %739 = vst.msk [vmem:[#allocation2 + $0x40] sm:$0xff] %vm35_vm8, %v2490_v27  ;;  %508 = vperm.xlu1 %1685, %v2493_v33  }
 0x19e   :  { %731 = vst.msk [vmem:[#allocation2] sm:$0xff] %vm35_vm8, %v2493_v33  ;;  %v2504_v23 = vpop.xlane.xlu0 %1007  ;;  %v2506_v58 = vpop.xlane.xlu1 %1005 }
 0x19f   :  { %3192 = vst [vmem:[#allocation20_spill] sm:$0xff] %v2506_v58 }
 0x1a2   :  { %v2508_v30 = vpop.xlane.xlu0 %1023  ;;  %v2510_v51 = vpop.xlane.xlu1 %1021 }
 0x1a3   :  { %3193 = vst [vmem:[#allocation21_spill] sm:$0xff] %v2508_v30 }
 0x1a6   :  { %v431_v37 = vpop.xlane.xlu1 %430  ;;  %v417_v0 = vpop.xlane.xlu0 %416 }
 0x1a7   :  { %v2517_v20 = vmax.f32 %v2512_v46, %v431_v37  ;;  %v2520_v24 = vmax.f32 %v2514_v5, %v417_v0  ;;  %v2586_v5 = vld [vmem:[#allocation2 + $0x68] sm:$0xff] }
 0x1a8   :  { %3209 = vst [vmem:[#allocation37_spill] sm:$0xff] %v2586_v5 }
 0x1a9   :  { %3196 = vst [vmem:[#allocation24_spill] sm:$0xff] %v2517_v20  ;;  %3197 = vst [vmem:[#allocation25_spill] sm:$0xff] %v2520_v24  ;;  %523 = vperm.xlu1 %1685, %v2520_v24  }
 0x1aa   :  { %741 = vst.msk [vmem:[#allocation2 + $0x50] sm:$0xff] %vm35_vm8, %v2517_v20  ;;  %734 = vst.msk [vmem:[#allocation2 + $0x18] sm:$0xff] %vm35_vm8, %v2520_v24  ;;  %v433_v37 = vpop.xlane.xlu0 %432  ;;  %v2533_v13 = vpop.xlane.xlu1 %1009 }
 0x1ab   :  { %3199 = vst [vmem:[#allocation27_spill] sm:$0xff] %v2533_v13  ;;  %v2536_v0 = vmax.f32 %v2522_v34, %v433_v37  ;;  %v2574_v34 = vld [vmem:[#allocation2 + $0x28] sm:$0xff] }
 0x1ac   :  { %3207 = vst [vmem:[#allocation35_spill] sm:$0xff] %v2574_v34 }
 0x1ad   :  { %742 = vst.msk [vmem:[#allocation2 + $0x58] sm:$0xff] %vm35_vm8, %v2536_v0  ;;  %563 = vperm.xlu1 %1685, %v2536_v0  }
 0x1ae   :  { %v415_v15 = vpop.xlane.xlu0 %414  ;;  %v2545_v11 = vpop.xlane.xlu1 %1025 }
 0x1af   :  { %3201 = vst [vmem:[#allocation29_spill] sm:$0xff] %v2545_v11  ;;  %v2548_v16 = vmax.f32 %v2538_v62, %v415_v15 }
 0x1b1   :  { %3202 = vst [vmem:[#allocation30_spill] sm:$0xff] %v2548_v16  ;;  %733 = vst.msk [vmem:[#allocation2 + $0x10] sm:$0xff] %vm35_vm8, %v2548_v16  ;;  %518 = vperm.xlu1 %1685, %v2548_v16  }
 0x1b2   :  { %v2557_v46 = vpop.xlane.xlu0 %1011  ;;  %v419_v19 = vpop.xlane.xlu1 %418 }
 0x1b3   :  { %v2560_v4 = vmax.f32 %v2555_v50, %v419_v19 }
 0x1b5   :  { %735 = vst.msk [vmem:[#allocation2 + $0x20] sm:$0xff] %vm35_vm8, %v2560_v4  ;;  %528 = vperm.xlu0 %1684, %v2560_v4  }
 0x1b6   :  { %v2569_v37 = vpop.xlane.xlu0 %1027  ;;  %v435_v16 = vpop.xlane.xlu1 %434 }
 0x1b7   :  { %3205 = vst [vmem:[#allocation33_spill] sm:$0xff] %v2569_v37  ;;  %v2572_v62 = vmax.f32 %v2562_v7, %v435_v16 }
 0x1b9   :  { %3206 = vst [vmem:[#allocation34_spill] sm:$0xff] %v2572_v62  ;;  %743 = vst.msk [vmem:[#allocation2 + $0x60] sm:$0xff] %vm35_vm8, %v2572_v62  ;;  %548 = vperm.xlu0 %1684, %v2490_v27  }
 0x1ba   :  { %v421_v15 = vpop.xlane.xlu0 %420  ;;  %v2581_v50 = vpop.xlane.xlu1 %1013 }
 0x1bb   :  { %v2584_v24 = vmax.f32 %v2574_v34, %v421_v15  ;;  %v2599_v15 = vld [vmem:[#allocation2 + $0x30] sm:$0xff] }
 0x1bc   :  { %3211 = vst [vmem:[#allocation39_spill] sm:$0xff] %v2599_v15 }
 0x1bd   :  { %3208 = vst [vmem:[#allocation36_spill] sm:$0xff] %v2584_v24  ;;  %736 = vst.msk [vmem:[#allocation2 + $0x28] sm:$0xff] %vm35_vm8, %v2584_v24  ;;  %533 = vperm.xlu1 %1685, %v2584_v24   ;;  %558 = vperm.xlu0 %1684, %v2517_v20  }
 0x1be   :  { %v437_v19 = vpop.xlane.xlu0 %436  ;;  %v2594_v7 = vpop.xlane.xlu1 %1029 }
 0x1bf   :  { %3210 = vst [vmem:[#allocation38_spill] sm:$0xff] %v2594_v7  ;;  %v2597_v13 = vmax.f32 %v2586_v5, %v437_v19  ;;  %v2612_v19 = vld [vmem:[#allocation2 + $0x70] sm:$0xff] }
 0x1c0   :  { %3213 = vst [vmem:[#allocation41_spill] sm:$0xff] %v2612_v19 }
 0x1c1   :  { %744 = vst.msk [vmem:[#allocation2 + $0x68] sm:$0xff] %vm35_vm8, %v2597_v13  ;;  %573 = vperm.xlu1 %1685, %v2597_v13   ;;  %568 = vperm.xlu0 %1684, %v2572_v62   ;;  %v1202_v62 = vld [vmem:[#allocation4 + $0x28] sm:$0xff] }
 0x1c2   :  { %v2607_v16 = vpop.xlane.xlu0 %1015  ;;  %v423_v34 = vpop.xlane.xlu1 %422 }
 0x1c3   :  { %3212 = vst [vmem:[#allocation40_spill] sm:$0xff] %v2607_v16  ;;  %v2610_v10 = vmax.f32 %v2599_v15, %v423_v34  ;;  %v1106_v34 = vsub.f32 %v2607_v16, %v2584_v24 }
 0x1c5   :  { %737 = vst.msk [vmem:[#allocation2 + $0x30] sm:$0xff] %vm35_vm8, %v2610_v10  ;;  %538 = vperm.xlu0 %1684, %v2610_v10   ;;  %v1127_v7 = vmul.f32 1.442695, %v1106_v34 }
 0x1c6   :  { %v2619_v33 = vpop.xlane.xlu0 %1031  ;;  %v439_v5 = vpop.xlane.xlu1 %438 }
 0x1c7   :  { %3214 = vst [vmem:[#allocation42_spill] sm:$0xff] %v2619_v33  ;;  %v2622_v57 = vmax.f32 %v2612_v19, %v439_v5  ;;  %v2636_v5 = vld [vmem:[#allocation2 + $0x78] sm:$0xff]  ;;  %1686 = vpow2.f32 %v1127_v7 }
 0x1c8   :  { %3218 = vst [vmem:[#allocation46_spill] sm:$0xff] %v2636_v5 }
 0x1c9   :  { %3215 = vst [vmem:[#allocation43_spill] sm:$0xff] %v2622_v57  ;;  %745 = vst.msk [vmem:[#allocation2 + $0x70] sm:$0xff] %vm35_vm8, %v2622_v57  ;;  %578 = vperm.xlu0 %1684, %v2622_v57   ;;  %v1110_v57 = vsub.f32 %v2508_v30, %v2470_v3 }
 0x1ca   :  { %v425_v58 = vpop.xlane.xlu0 %424 }
 0x1cb   :  { %v2634_v15 = vmax.f32 %v2626_v56, %v425_v58  ;;  %v1135_v56 = vmul.f32 1.442695, %v1110_v57  ;;  %v1114_v58 = vsub.f32 %v2619_v33, %v2597_v13 }
 0x1cd   :  { %3217 = vst [vmem:[#allocation45_spill] sm:$0xff] %v2634_v15  ;;  %738 = vst.msk [vmem:[#allocation2 + $0x38] sm:$0xff] %vm35_vm8, %v2634_v15  ;;  %543 = vperm.xlu1 %1685, %v2634_v15   ;;  %v1143_v57 = vmul.f32 1.442695, %v1114_v58 }
 0x1ce   :  { %v441_v61 = vpop.xlane.xlu0 %440 }
 0x1cf   :  { %v2644_v19 = vmax.f32 %v2636_v5, %v441_v61  ;;  %v1112_v61 = vsub.f32 %v2569_v37, %v2536_v0 }
 0x1d1   :  { %746 = vst.msk [vmem:[#allocation2 + $0x78] sm:$0xff] %vm35_vm8, %v2644_v19  ;;  %583 = vperm.xlu1 %1685, %v2644_v19   ;;  %v1139_v7 = vmul.f32 1.442695, %v1112_v61  ;;  %v1687_v5 = vpop.eup %1686 }
 0x1d2   :  { %v2653_v34 = vpop.xlane.xlu0 %1019 }
 0x1d3   :  { %3219 = vst [vmem:[#allocation47_spill] sm:$0xff] %v2653_v34  ;;  %v1108_v24 = vsub.f32 %v2653_v34, %v2634_v15 }
 0x1d5   :  { %v1131_v16 = vmul.f32 1.442695, %v1108_v24 }
 0x1d6   :  { %v2659_v30 = vpop.xlane.xlu0 %1035 }
 0x1d7   :  { %3220 = vst [vmem:[#allocation48_spill] sm:$0xff] %v2659_v30  ;;  %1688 = vpow2.f32 %v1131_v16  ;;  %v1116_v37 = vsub.f32 %v2659_v30, %v2644_v19  ;;  %v1204_v16 = vld [vmem:[#allocation4 + $0x38] sm:$0xff] }
 0x1d8   :  { %1690 = vpow2.f32 %v1135_v56  ;;  %v1208_v30 = vld [vmem:[#allocation4 + $0x58] sm:$0xff] }
 0x1d9   :  { %1692 = vpow2.f32 %v1139_v7  ;;  %v1147_v61 = vmul.f32 1.442695, %v1116_v37 }
 0x1da   :  { %v1064_v3 = vpop.xlane.xlu0 %1063  ;;  %1694 = vpow2.f32 %v1143_v57  ;;  %v848_v57 = vmul.f32 %v2269_v48, %v2078_v17 }
 0x1db   :  { %v2663_v11 = vmul.f32 %v1687_v5, %v1064_v3  ;;  %v1218_v20 = vsub.f32 %v1202_v62, %v1064_v3  ;;  %v1206_v62 = vld [vmem:[#allocation4 + $0x48] sm:$0xff]  ;;  %1696 = vpow2.f32 %v1147_v61 }
 0x1dd   :  { %1234 = vst.msk [vmem:[#allocation4 + $0x28] sm:$0xff] %vm35_vm8, %v1218_v20 }
 0x1de   :  { %v1068_v24 = vpop.xlane.xlu0 %1067 }
 0x1df   :  { %v1220_v56 = vsub.f32 %v1204_v16, %v1068_v24 }
 0x1e1   :  { %v1689_v34 = vpop.eup %1688  ;;  %1236 = vst.msk [vmem:[#allocation4 + $0x38] sm:$0xff] %vm35_vm8, %v1220_v56 }
 0x1e2   :  { %v1691_v33 = vpop.eup %1690  ;;  %v2669_v15 = vmul.f32 %v1689_v34, %v1068_v24  ;;  %v1072_v5 = vpop.xlane.xlu0 %1071 }
 0x1e3   :  { %v2671_v3 = vmul.f32 %v1691_v33, %v1072_v5  ;;  %v1222_v58 = vsub.f32 %v1206_v62, %v1072_v5  ;;  %v1693_v20 = vpop.eup %1692  ;;  %v1210_v33 = vld [vmem:[#allocation4 + $0x68] sm:$0xff] }
 0x1e4   :  { %3221 = vst [vmem:[#allocation49_spill] sm:$0xff] %v2669_v15  ;;  %v1695_v34 = vpop.eup %1694  ;;  %v830_v15 = vld [vmem:[#allocation5 + $0x18] sm:$0xff] }
 0x1e5   :  { %1238 = vst.msk [vmem:[#allocation4 + $0x48] sm:$0xff] %vm35_vm8, %v1222_v58  ;;  %v1697_v5 = vpop.eup %1696  ;;  %v1212_v58 = vld [vmem:[#allocation4 + $0x78] sm:$0xff] }
 0x1e6   :  { %v1076_v7 = vpop.xlane.xlu0 %1075 }
 0x1e7   :  { %v2674_v16 = vmul.f32 %v1693_v20, %v1076_v7  ;;  %v1224_v37 = vsub.f32 %v1208_v30, %v1076_v7  ;;  %v828_v7 = vld [vmem:[#allocation5 + $0x8] sm:$0xff] }
 0x1e8   :  { %869 = vadd.xlane.f32.xlu0 %v848_v57 }
 0x1e9   :  { %1240 = vst.msk [vmem:[#allocation4 + $0x58] sm:$0xff] %vm35_vm8, %v1224_v37  ;;  %v3222_v37 = vmov 0.0  }
 0x1ea   :  { %v1080_v24 = vpop.xlane.xlu0 %1079  ;;  %v1041_v57 = vsel %vm977_vm1, 1.0, %v3222_v37  ;;  %v1045_v8 = vsel %vm981_vm10, 1.0, %v3222_v37  ;;  %v1049_v47 = vsel %vm985_vm3, 1.0, %v3222_v37  ;;  %v1051_v1 = vsel %vm987_vm14, 1.0, %v3222_v37 }
 0x1eb   :  { %v2679_v56 = vmul.f32 %v1695_v34, %v1080_v24  ;;  %v1226_v61 = vsub.f32 %v1210_v33, %v1080_v24  ;;  %v1043_v33 = vsel %vm979_vm13, 1.0, %v3222_v37 }
 0x1ed   :  { %1242 = vst.msk [vmem:[#allocation4 + $0x68] sm:$0xff] %vm35_vm8, %v1226_v61 }
 0x1ee   :  { %v1084_v62 = vpop.xlane.xlu0 %1083 }
 0x1ef   :  { %v2682_v20 = vmul.f32 %v1697_v5, %v1084_v62  ;;  %v1228_v30 = vsub.f32 %v1212_v58, %v1084_v62  ;;  %v1047_v58 = vsel %vm983_vm0, 1.0, %v3222_v37 }
 0x1f1   :  { %1244 = vst.msk [vmem:[#allocation4 + $0x78] sm:$0xff] %vm35_vm8, %v1228_v30  ;;  %v843_v30 = vmul.f32 %v2053_v6, %v2251_v41 }
 0x1f2   :  { %v862_v17 = vpop.xlane.xlu0 %861 }
 0x1f3   :  { %v892_v34 = vadd.f32 %v862_v17, %v828_v7  ;;  %v2717_v7 = vpop.xlane.xlu1 %1017  ;;  %v845_v17 = vmul.f32 %v2058_v9, %v2261_v45 }
 0x1f5   :  { %908 = vst.msk [vmem:[#allocation5 + $0x8] sm:$0xff] %vm35_vm8, %v892_v34  ;;  %1061 = vadd.xlane.f32.xlu1 %v1041_v57 }
 0x1f6   :  { %v866_v24 = vpop.xlane.xlu0 %865 }
 0x1f7   :  { %v894_v61 = vadd.f32 %v866_v24, %v830_v15  ;;  %v2723_v57 = vpop.xlane.xlu1 %1033 }
 0x1f9   :  { %910 = vst.msk [vmem:[#allocation5 + $0x18] sm:$0xff] %vm35_vm8, %v894_v61  ;;  %1065 = vadd.xlane.f32.xlu1 %v1043_v33 }
 0x1fc   :  { %v1246_v5 = vld [vmem:[#allocation5 + $0x8] sm:$0xff] }
 0x1fd   :  { %v1262_v62 = vsub.f32 %v1246_v5, %v2504_v23  ;;  %1069 = vadd.xlane.f32.xlu1 %v1045_v8 }
 0x1ff   :  { %1278 = vst.msk [vmem:[#allocation5 + $0x8] sm:$0xff] %vm35_vm8, %v1262_v62 }
 0x200   :  { %v1248_v2 = vld [vmem:[#allocation5 + $0x18] sm:$0xff] }
 0x201   :  { %v1264_v15 = vsub.f32 %v1248_v2, %v2557_v46  ;;  %1073 = vadd.xlane.f32.xlu1 %v1047_v58 }
 0x203   :  { %1280 = vst.msk [vmem:[#allocation5 + $0x18] sm:$0xff] %vm35_vm8, %v1264_v15 }
 0x205   :  { %1077 = vadd.xlane.f32.xlu1 %v1049_v47 }
 0x209   :  { %1081 = vadd.xlane.f32.xlu1 %v1051_v1 }
 0x20d   :  { %859 = vadd.xlane.f32.xlu1 %v843_v30 }
 0x211   :  { %863 = vadd.xlane.f32.xlu1 %v845_v17 }
 0x215   :  { %867 = vadd.xlane.f32.xlu1 %v847_v12 }
 0x218   :  { %v554_v34 = vpop.permute.xlu1 %553  ;;  %v514_v60 = vpop.permute.xlu0 %513 }
 0x219   :  { %v595_v29 = vsub.f32 %v2245_v39, %v554_v34  ;;  %v587_v37 = vsub.f32 %v2243_v38, %v514_v60 }
 0x21b   :  { %v620_v6 = vmul.f32 1.442695, %v595_v29  ;;  %v604_v24 = vmul.f32 1.442695, %v587_v37 }
 0x21c   :  { %v509_v33 = vpop.permute.xlu1 %508 }
 0x21d   :  { %1698 = vpow2.f32 %v620_v6  ;;  %v586_v61 = vsub.f32 %v2251_v41, %v509_v33 }
 0x21e   :  { %1700 = vpow2.f32 %v604_v24 }
 0x21f   :  { %v602_v9 = vmul.f32 1.442695, %v586_v61 }
 0x221   :  { %1702 = vpow2.f32 %v602_v9 }
 0x227   :  { %v1699_v8 = vpop.eup %1698 }
 0x228   :  { %v1701_v14 = vpop.eup %1700  ;;  %684 = vadd.xlane.f32.xlu0 %v1699_v8  ;;  %v524_v5 = vpop.permute.xlu1 %523 }
 0x229   :  { %668 = vadd.xlane.f32.xlu1 %v1701_v14  ;;  %v589_v62 = vsub.f32 %v2253_v42, %v524_v5 }
 0x22b   :  { %v1703_v58 = vpop.eup %1702  ;;  %v608_v2 = vmul.f32 1.442695, %v589_v62 }
 0x22c   :  { %666 = vadd.xlane.f32.xlu0 %v1703_v58  ;;  %v564_v38 = vpop.permute.xlu1 %563 }
 0x22d   :  { %1704 = vpow2.f32 %v608_v2  ;;  %v597_v15 = vsub.f32 %v2255_v43, %v564_v38 }
 0x22f   :  { %v624_v47 = vmul.f32 1.442695, %v597_v15 }
 0x230   :  { %v519_v1 = vpop.permute.xlu1 %518 }
 0x231   :  { %1706 = vpow2.f32 %v624_v47  ;;  %v588_v41 = vsub.f32 %v2261_v45, %v519_v1 }
 0x233   :  { %v606_v30 = vmul.f32 1.442695, %v588_v41 }
 0x234   :  { %v529_v17 = vpop.permute.xlu0 %528 }
 0x235   :  { %1708 = vpow2.f32 %v606_v30  ;;  %v590_v33 = vsub.f32 %v2283_v53, %v529_v17 }
 0x237   :  { %v1705_v12 = vpop.eup %1704  ;;  %v610_v58 = vmul.f32 1.442695, %v590_v33 }
 0x238   :  { %672 = vadd.xlane.f32.xlu0 %v1705_v12  ;;  %v549_v34 = vpop.permute.xlu0 %548 }
 0x239   :  { %v594_v42 = vsub.f32 %v2248_v40, %v549_v34 }
 0x23b   :  { %v1707_v60 = vpop.eup %1706  ;;  %v618_v29 = vmul.f32 1.442695, %v594_v42 }
 0x23c   :  { %688 = vadd.xlane.f32.xlu0 %v1707_v60  ;;  %v534_v37 = vpop.permute.xlu1 %533  ;;  %v559_v6 = vpop.permute.xlu0 %558 }
 0x23d   :  { %v591_v24 = vsub.f32 %v2269_v48, %v534_v37  ;;  %1710 = vpow2.f32 %v618_v29  ;;  %v596_v45 = vsub.f32 %v2257_v44, %v559_v6 }
 0x23f   :  { %v1709_v61 = vpop.eup %1708  ;;  %v612_v9 = vmul.f32 1.442695, %v591_v24  ;;  %v622_v8 = vmul.f32 1.442695, %v596_v45 }
 0x240   :  { %670 = vadd.xlane.f32.xlu0 %v1709_v61  ;;  %v574_v14 = vpop.permute.xlu1 %573  ;;  %v569_v5 = vpop.permute.xlu0 %568 }
 0x241   :  { %1712 = vpow2.f32 %v612_v9  ;;  %v599_v62 = vsub.f32 %v2271_v49, %v574_v14  ;;  %v598_v2 = vsub.f32 %v2281_v52, %v569_v5 }
 0x242   :  { %1714 = vpow2.f32 %v622_v8 }
 0x243   :  { %v628_v38 = vmul.f32 1.442695, %v599_v62  ;;  %v626_v53 = vmul.f32 1.442695, %v598_v2  ;;  %v849_v62 = vmul.f32 %v2082_v18, %v2303_v63  ;;  %v851_v2 = vmul.f32 %v2092_v22, %v2248_v40 }
 0x244   :  { %v539_v48 = vpop.permute.xlu0 %538  ;;  %v854_v18 = vmul.f32 %v2255_v43, %v2108_v28  ;;  %v857_v22 = vmul.f32 %v2123_v35, %v2301_v59 }
 0x245   :  { %1716 = vpow2.f32 %v628_v38  ;;  %v592_v15 = vsub.f32 %v2303_v63, %v539_v48  ;;  %v852_v38 = vmul.f32 %v2245_v39, %v2098_v25  ;;  %v853_v48 = vmul.f32 %v2102_v26, %v2257_v44  ;;  %v832_v39 = vld [vmem:[#allocation5 + $0x28] sm:$0xff] }
 0x246   :  { %1718 = vpow2.f32 %v610_v58  ;;  %v850_v58 = vmul.f32 %v2289_v54, %v2088_v21  ;;  %v855_v63 = vmul.f32 %v2113_v31, %v2281_v52  ;;  %v856_v21 = vmul.f32 %v2271_v49, %v2118_v32  ;;  %v3223_v49 = vld [vmem:[#allocation24_spill] sm:$0xff]  ;;  %v3224_v52 = vld [vmem:[#allocation29_spill] sm:$0xff] }
 0x247   :  { %v1711_v47 = vpop.eup %1710  ;;  %1720 = vpow2.f32 %v626_v53  ;;  %v614_v41 = vmul.f32 1.442695, %v592_v15  ;;  %v1105_v25 = vsub.f32 %v2581_v50, %v2560_v4  ;;  %v858_v26 = vmul.f32 %v2291_v55, %v2128_v36 }
 0x248   :  { %v579_v1 = vpop.permute.xlu0 %578  ;;  %682 = vadd.xlane.f32.xlu1 %v1711_v47  ;;  %v1107_v31 = vsub.f32 %v2717_v7, %v2610_v10  ;;  %v1109_v32 = vsub.f32 %v2510_v51, %v2490_v27  ;;  %v3227_v47 = vld [vmem:[#allocation40_spill] sm:$0xff] }
 0x249   :  { %v600_v30 = vsub.f32 %v2301_v59, %v579_v1  ;;  %1722 = vpow2.f32 %v614_v41  ;;  %v1125_v28 = vmul.f32 1.442695, %v1105_v25  ;;  %v3226_v59 = vld [vmem:[#allocation38_spill] sm:$0xff] }
 0x24a   :  { %v1129_v35 = vmul.f32 1.442695, %v1107_v31  ;;  %v1133_v44 = vmul.f32 1.442695, %v1109_v32  ;;  %v1211_v31 = vld [vmem:[#allocation4 + $0x70] sm:$0xff]  ;;  %v827_v32 = vld [vmem:[#allocation5] sm:$0xff] }
 0x24b   :  { %v1713_v17 = vpop.eup %1712  ;;  %v630_v60 = vmul.f32 1.442695, %v600_v30  ;;  %v1201_v30 = vld [vmem:[#allocation4 + $0x20] sm:$0xff] }
 0x24c   :  { %v1715_v12 = vpop.eup %1714  ;;  %676 = vadd.xlane.f32.xlu0 %v1713_v17  ;;  %v544_v34 = vpop.permute.xlu1 %543 }
 0x24d   :  { %686 = vadd.xlane.f32.xlu1 %v1715_v12  ;;  %v593_v42 = vsub.f32 %v2289_v54, %v544_v34  ;;  %v1111_v54 = vsub.f32 %v3224_v52, %v3223_v49 }
 0x24f   :  { %v1717_v29 = vpop.eup %1716  ;;  %v616_v37 = vmul.f32 1.442695, %v593_v42  ;;  %v1137_v36 = vmul.f32 1.442695, %v1111_v54  ;;  %v829_v54 = vld [vmem:[#allocation5 + $0x10] sm:$0xff] }
 0x250   :  { %v1719_v6 = vpop.eup %1718  ;;  %692 = vadd.xlane.f32.xlu0 %v1717_v29  ;;  %v584_v24 = vpop.permute.xlu1 %583 }
 0x251   :  { %1724 = vpow2.f32 %v616_v37  ;;  %674 = vadd.xlane.f32.xlu1 %v1719_v6  ;;  %v601_v33 = vsub.f32 %v2291_v55, %v584_v24  ;;  %v1721_v61 = vpop.eup %1720  ;;  %v3225_v55 = vld [vmem:[#allocation34_spill] sm:$0xff]  ;;  %v1203_v6 = vld [vmem:[#allocation4 + $0x30] sm:$0xff] }
 0x252   :  { %1726 = vpow2.f32 %v630_v60  ;;  %v1113_v53 = vsub.f32 %v3226_v59, %v3225_v55  ;;  %v3228_v60 = vld [vmem:[#allocation43_spill] sm:$0xff] }
 0x253   :  { %v632_v45 = vmul.f32 1.442695, %v601_v33  ;;  %v1723_v9 = vpop.eup %1722  ;;  %v1115_v29 = vsub.f32 %v2723_v57, %v3228_v60 }
 0x254   :  { %v1141_v42 = vmul.f32 1.442695, %v1113_v53 }
 0x255   :  { %1728 = vpow2.f32 %v632_v45  ;;  %690 = vadd.xlane.f32.xlu1 %v1721_v61  ;;  %v1145_v61 = vmul.f32 1.442695, %v1115_v29  ;;  %v3233_v29 = vld [vmem:[#allocation16_spill] sm:$0xff] }
 0x256   :  { %1730 = vpow2.f32 %v1125_v28 }
 0x257   :  { %1732 = vpow2.f32 %v1129_v35 }
 0x258   :  { %1734 = vpow2.f32 %v1133_v44 }
 0x259   :  { %678 = vadd.xlane.f32.xlu1 %v1723_v9  ;;  %1736 = vpow2.f32 %v1137_v36 }
 0x25a   :  { %1738 = vpow2.f32 %v1141_v42  ;;  %v3232_v42 = vld [vmem:[#allocation14_spill] sm:$0xff] }
 0x25b   :  { %v1725_v8 = vpop.eup %1724  ;;  %1740 = vpow2.f32 %v1145_v61 }
 0x25c   :  { %v1727_v14 = vpop.eup %1726  ;;  %680 = vadd.xlane.f32.xlu0 %v1725_v8  ;;  %v1205_v8 = vld [vmem:[#allocation4 + $0x40] sm:$0xff] }
 0x25d   :  { %694 = vadd.xlane.f32.xlu1 %v1727_v14 }
 0x25f   :  { %v1729_v5 = vpop.eup %1728 }
 0x260   :  { %696 = vadd.xlane.f32.xlu0 %v1729_v5  ;;  %v1731_v41 = vpop.eup %1730 }
 0x261   :  { %871 = vadd.xlane.f32.xlu1 %v849_v62  ;;  %v1733_v37 = vpop.eup %1732 }
 0x262   :  { %v1735_v9 = vpop.eup %1734 }
 0x264   :  { %873 = vadd.xlane.f32.xlu0 %v850_v58  ;;  %v1737_v58 = vpop.eup %1736 }
 0x265   :  { %875 = vadd.xlane.f32.xlu1 %v851_v2  ;;  %v1207_v2 = vld [vmem:[#allocation4 + $0x50] sm:$0xff] }
 0x268   :  { %877 = vadd.xlane.f32.xlu0 %v852_v38 }
 0x269   :  { %879 = vadd.xlane.f32.xlu1 %v853_v48 }
 0x26c   :  { %881 = vadd.xlane.f32.xlu0 %v854_v18 }
 0x26d   :  { %883 = vadd.xlane.f32.xlu1 %v855_v63  ;;  %v1739_v63 = vpop.eup %1738 }
 0x26e   :  { %v1741_v28 = vpop.eup %1740 }
 0x270   :  { %885 = vadd.xlane.f32.xlu0 %v856_v21  ;;  %v1209_v21 = vld [vmem:[#allocation4 + $0x60] sm:$0xff] }
 0x271   :  { %887 = vadd.xlane.f32.xlu1 %v857_v22 }
 0x274   :  { %889 = vadd.xlane.f32.xlu0 %v858_v26 }
 0x275   :  { %v870_v40 = vpop.xlane.xlu0 %869 }
 0x276   :  { %v896_v43 = vadd.f32 %v870_v40, %v832_v39 }
 0x278   :  { %912 = vst.msk [vmem:[#allocation5 + $0x28] sm:$0xff] %vm35_vm8, %v896_v43 }
 0x27f   :  { %v1250_v15 = vld [vmem:[#allocation5 + $0x28] sm:$0xff] }
 0x280   :  { %v1266_v1 = vsub.f32 %v1250_v15, %v3227_v47  ;;  %v831_v15 = vld [vmem:[#allocation5 + $0x20] sm:$0xff] }
 0x282   :  { %v1062_v17 = vpop.xlane.xlu1 %1061  ;;  %1282 = vst.msk [vmem:[#allocation5 + $0x28] sm:$0xff] %vm35_vm8, %v1266_v1  ;;  %v3229_v1 = vld [vmem:[#allocation13_spill] sm:$0xff] }
 0x283   :  { %v2774_v12 = vmul.f32 %v1731_v41, %v1062_v17  ;;  %v1217_v34 = vsub.f32 %v1201_v30, %v1062_v17  ;;  %v3230_v41 = vld [vmem:[#allocation15_spill] sm:$0xff] }
 0x284   :  { %v3231_v30 = vsub.f32 %v3229_v1, %v3230_v41  ;;  %v634_v1 = vld [vmem:[#allocation3] sm:$0xff] }
 0x285   :  { %1233 = vst.msk [vmem:[#allocation4 + $0x20] sm:$0xff] %vm35_vm8, %v1217_v34 }
 0x286   :  { %v1066_v24 = vpop.xlane.xlu1 %1065  ;;  %v492_v17 = vmul.f32 1.442695, %v3231_v30  ;;  %v3243_v30 = vld [vmem:[#allocation26_spill] sm:$0xff] }
 0x287   :  { %v2779_v33 = vmul.f32 %v1733_v37, %v1066_v24  ;;  %v1219_v45 = vsub.f32 %v1203_v6, %v1066_v24  ;;  %v3234_v37 = vsub.f32 %v3232_v42, %v3233_v29 }
 0x288   :  { %1742 = vpow2.f32 %v492_v17  ;;  %v3244_v17 = vsub.f32 %v3243_v30, %v2536_v0  ;;  %v3255_v30 = vld [vmem:[#allocation22_spill] sm:$0xff] }
 0x289   :  { %1235 = vst.msk [vmem:[#allocation4 + $0x30] sm:$0xff] %vm35_vm8, %v1219_v45  ;;  %v476_v6 = vmul.f32 1.442695, %v3234_v37  ;;  %v3235_v45 = vld [vmem:[#allocation20_spill] sm:$0xff] }
 0x28a   :  { %v1070_v14 = vpop.xlane.xlu1 %1069 }
 0x28b   :  { %v2782_v5 = vmul.f32 %v1735_v9, %v1070_v14  ;;  %v1221_v62 = vsub.f32 %v1205_v8, %v1070_v14  ;;  %v3236_v9 = vld [vmem:[#allocation18_spill] sm:$0xff]  ;;  %v3237_v8 = vld [vmem:[#allocation19_spill] sm:$0xff]  ;;  %1744 = vpow2.f32 %v476_v6 }
 0x28c   :  { %v3238_v14 = vsub.f32 %v3236_v9, %v3237_v8 }
 0x28d   :  { %1237 = vst.msk [vmem:[#allocation4 + $0x40] sm:$0xff] %vm35_vm8, %v1221_v62 }
 0x28e   :  { %v1074_v38 = vpop.xlane.xlu1 %1073  ;;  %v474_v62 = vmul.f32 1.442695, %v3238_v14 }
 0x28f   :  { %v2785_v48 = vmul.f32 %v1737_v58, %v1074_v38  ;;  %v1223_v18 = vsub.f32 %v1207_v2, %v1074_v38  ;;  %v3239_v2 = vld [vmem:[#allocation27_spill] sm:$0xff] }
 0x290   :  { %1746 = vpow2.f32 %v474_v62 }
 0x291   :  { %1239 = vst.msk [vmem:[#allocation4 + $0x50] sm:$0xff] %vm35_vm8, %v1223_v18  ;;  %v1102_v18 = vsub.f32 %v2504_v23, %v3233_v29  ;;  %v3241_v23 = vld [vmem:[#allocation25_spill] sm:$0xff] }
 0x292   :  { %v1078_v22 = vpop.xlane.xlu1 %1077  ;;  %v1104_v37 = vsub.f32 %v2557_v46, %v3241_v23 }
 0x293   :  { %v2788_v25 = vmul.f32 %v1739_v63, %v1078_v22  ;;  %v1225_v26 = vsub.f32 %v1209_v21, %v1078_v22  ;;  %v1101_v21 = vsub.f32 %v3235_v45, %v3237_v8 }
 0x294   :  { %v1123_v0 = vmul.f32 1.442695, %v1104_v37  ;;  %v636_v37 = vld [vmem:[#allocation3 + $0x10] sm:$0xff] }
 0x295   :  { %1241 = vst.msk [vmem:[#allocation4 + $0x60] sm:$0xff] %vm35_vm8, %v1225_v26  ;;  %v1119_v26 = vmul.f32 1.442695, %v1102_v18 }
 0x296   :  { %v1082_v39 = vpop.xlane.xlu1 %1081 }
 0x297   :  { %v2791_v40 = vmul.f32 %v1741_v28, %v1082_v39  ;;  %v1227_v43 = vsub.f32 %v1211_v31, %v1082_v39  ;;  %v1743_v28 = vpop.eup %1742  ;;  %v1117_v31 = vmul.f32 1.442695, %v1101_v21  ;;  %v643_v39 = vld [vmem:[#allocation3 + $0x48] sm:$0xff]  ;;  %1748 = vpow2.f32 %v1119_v26 }
 0x299   :  { %1243 = vst.msk [vmem:[#allocation4 + $0x70] sm:$0xff] %vm35_vm8, %v1227_v43  ;;  %v1745_v43 = vpop.eup %1744  ;;  %1750 = vpow2.f32 %v1117_v31  ;;  %v3249_v31 = vld [vmem:[#allocation9_spill] sm:$0xff] }
 0x29a   :  { %v860_v35 = vpop.xlane.xlu1 %859 }
 0x29b   :  { %v891_v44 = vadd.f32 %v860_v35, %v827_v32  ;;  %v635_v32 = vld [vmem:[#allocation3 + $0x8] sm:$0xff]  ;;  %v3240_v35 = vld [vmem:[#allocation23_spill] sm:$0xff] }
 0x29d   :  { %907 = vst.msk [vmem:[#allocation5] sm:$0xff] %vm35_vm8, %v891_v44  ;;  %v3242_v44 = vsub.f32 %v3240_v35, %v3241_v23 }
 0x29e   :  { %v864_v36 = vpop.xlane.xlu1 %863 }
 0x29f   :  { %v893_v53 = vadd.f32 %v864_v36, %v829_v54  ;;  %v480_v54 = vmul.f32 1.442695, %v3242_v44  ;;  %v659_v36 = vmul.f32 %v1743_v28, %v643_v39  ;;  %v637_v28 = vld [vmem:[#allocation3 + $0x18] sm:$0xff] }
 0x2a1   :  { %909 = vst.msk [vmem:[#allocation5 + $0x10] sm:$0xff] %vm35_vm8, %v893_v53  ;;  %v1747_v53 = vpop.eup %1746  ;;  %1752 = vpow2.f32 %v480_v54 }
 0x2a2   :  { %v868_v47 = vpop.xlane.xlu1 %867  ;;  %v650_v29 = vmul.f32 %v1747_v53, %v634_v1  ;;  %v1749_v14 = vpop.eup %1748 }
 0x2a3   :  { %v895_v34 = vadd.f32 %v868_v47, %v831_v15  ;;  %v651_v47 = vmul.f32 %v1745_v43, %v635_v32  ;;  %v1751_v62 = vpop.eup %1750  ;;  %v3250_v32 = vld [vmem:[#allocation17_spill] sm:$0xff] }
 0x2a4   :  { %v1245_v24 = vld [vmem:[#allocation5] sm:$0xff]  ;;  %v1149_v39 = vmul.f32 %v1751_v62, %v3249_v31  ;;  %v3251_v35 = vsub.f32 %v3250_v32, %v2490_v27 }
 0x2a5   :  { %v1261_v61 = vsub.f32 %v1245_v24, %v3235_v45  ;;  %911 = vst.msk [vmem:[#allocation5 + $0x20] sm:$0xff] %vm35_vm8, %v895_v34  ;;  %v496_v34 = vmul.f32 1.442695, %v3244_v17  ;;  %v3245_v45 = vld [vmem:[#allocation28_spill] sm:$0xff]  ;;  %v3256_v17 = vsub.f32 %v3255_v30, %v3223_v49  ;;  %v2853_v49 = vld [vmem:[#allocation4] sm:$0xff] }
 0x2a6   :  { %v490_v23 = vmul.f32 1.442695, %v3251_v35  ;;  %vm1312_vm6 = vcmp.lt.f32.partialorder %v2853_v49, 1e-06  ;;  %v642_v32 = vld [vmem:[#allocation3 + $0x40] sm:$0xff] }
 0x2a7   :  { %1277 = vst.msk [vmem:[#allocation5] sm:$0xff] %vm35_vm8, %v1261_v61  ;;  %1754 = vpow2.f32 %v496_v34  ;;  %v3246_v61 = vld [vmem:[#allocation30_spill] sm:$0xff]  ;;  %v494_v34 = vmul.f32 1.442695, %v3256_v17 }
 0x2a8   :  { %v1247_v58 = vld [vmem:[#allocation5 + $0x10] sm:$0xff]  ;;  %v3247_v9 = vsub.f32 %v3245_v45, %v3246_v61 }
 0x2a9   :  { %v1263_v38 = vsub.f32 %v1247_v58, %v3239_v2  ;;  %v3248_v58 = vld [vmem:[#allocation10_spill] sm:$0xff] }
 0x2aa   :  { %v478_v8 = vmul.f32 1.442695, %v3247_v9  ;;  %v3257_v9 = vld [vmem:[#allocation37_spill] sm:$0xff] }
 0x2ab   :  { %1279 = vst.msk [vmem:[#allocation5 + $0x10] sm:$0xff] %vm35_vm8, %v1263_v38  ;;  %v1150_v38 = vmul.f32 %v1749_v14, %v3248_v58  ;;  %v1753_v21 = vpop.eup %1752 }
 0x2ac   :  { %v1249_v63 = vld [vmem:[#allocation5 + $0x20] sm:$0xff]  ;;  %1756 = vpow2.f32 %v478_v8  ;;  %v653_v44 = vmul.f32 %v1753_v21, %v637_v28  ;;  %v3258_v8 = vsub.f32 %v3257_v9, %v2597_v13 }
 0x2ad   :  { %v1265_v22 = vsub.f32 %v1249_v63, %v2581_v50  ;;  %1758 = vpow2.f32 %v1123_v0  ;;  %v3259_v0 = vld [vmem:[#allocation31_spill] sm:$0xff]  ;;  %v3270_v9 = vld [vmem:[#allocation41_spill] sm:$0xff] }
 0x2ae   :  { %1760 = vpow2.f32 %v490_v23  ;;  %v500_v14 = vmul.f32 1.442695, %v3258_v8  ;;  %v3260_v62 = vsub.f32 %v3259_v0, %v2560_v4  ;;  %v3262_v4 = vld [vmem:[#allocation32_spill] sm:$0xff]  ;;  %v1328_v23 = vsel %vm1312_vm6, 1.0, %v2853_v49 }
 0x2af   :  { %1281 = vst.msk [vmem:[#allocation5 + $0x20] sm:$0xff] %vm35_vm8, %v1265_v22  ;;  %v1103_v22 = vsub.f32 %v3239_v2, %v3246_v61  ;;  %v645_v2 = vld [vmem:[#allocation3 + $0x58] sm:$0xff]  ;;  %v3263_v28 = vsub.f32 %v3262_v4, %v3225_v55  ;;  %v3271_v8 = vsub.f32 %v3270_v9, %v3228_v60 }
 0x2b0   :  { %v482_v58 = vmul.f32 1.442695, %v3260_v62 }
 0x2b1   :  { %v1755_v54 = vpop.eup %1754  ;;  %v498_v31 = vmul.f32 1.442695, %v3263_v28 }
 0x2b2   :  { %v661_v27 = vmul.f32 %v1755_v54, %v645_v2 }
 0x2b5   :  { %v685_v15 = vpop.xlane.xlu0 %684 }
 0x2b6   :  { %v707_v50 = vadd.f32 %v685_v15, %v659_v36  ;;  %v669_v41 = vpop.xlane.xlu1 %668  ;;  %v1121_v36 = vmul.f32 1.442695, %v1103_v22  ;;  %v3252_v15 = vld [vmem:[#allocation35_spill] sm:$0xff] }
 0x2b7   :  { %v699_v42 = vadd.f32 %v669_v41, %v651_v47  ;;  %v3253_v47 = vld [vmem:[#allocation36_spill] sm:$0xff] }
 0x2b8   :  { %724 = vst.msk [vmem:[#allocation3 + $0x48] sm:$0xff] %vm35_vm8, %v707_v50  ;;  %v3254_v1 = vsub.f32 %v3252_v15, %v3253_v47  ;;  %1762 = vpow2.f32 %v1121_v36  ;;  %v639_v47 = vld [vmem:[#allocation3 + $0x28] sm:$0xff] }
 0x2b9   :  { %716 = vst.msk [vmem:[#allocation3 + $0x8] sm:$0xff] %vm35_vm8, %v699_v42  ;;  %v667_v6 = vpop.xlane.xlu0 %666  ;;  %v1757_v42 = vpop.eup %1756 }
 0x2ba   :  { %v698_v24 = vadd.f32 %v667_v6, %v650_v29  ;;  %v484_v50 = vmul.f32 1.442695, %v3254_v1  ;;  %v2848_v6 = vld [vmem:[#allocation4 + $0x8] sm:$0xff]  ;;  %v1759_v61 = vpop.eup %1758 }
 0x2bb   :  { %vm1313_vm5 = vcmp.lt.f32.partialorder %v2848_v6, 1e-06 }
 0x2bc   :  { %715 = vst.msk [vmem:[#allocation3] sm:$0xff] %vm35_vm8, %v698_v24  ;;  %1764 = vpow2.f32 %v484_v50  ;;  %v3266_v50 = vld [vmem:[#allocation11_spill] sm:$0xff] }
 0x2bf   :  { %v1094_v18 = vld [vmem:[#allocation3 + $0x48] sm:$0xff] }
 0x2c0   :  { %v1174_v46 = vsub.f32 %v1094_v18, %v2671_v3  ;;  %v1086_v63 = vld [vmem:[#allocation3 + $0x8] sm:$0xff] }
 0x2c1   :  { %v1166_v26 = vsub.f32 %v1086_v63, %v1150_v38  ;;  %v652_v38 = vmul.f32 %v1757_v42, %v636_v37  ;;  %v3261_v63 = vld [vmem:[#allocation12_spill] sm:$0xff] }
 0x2c2   :  { %1190 = vst.msk [vmem:[#allocation3 + $0x48] sm:$0xff] %vm35_vm8, %v1174_v46  ;;  %v1152_v21 = vmul.f32 %v1759_v61, %v3261_v63  ;;  %v3267_v42 = vld [vmem:[#allocation44_spill] sm:$0xff] }
 0x2c3   :  { %1182 = vst.msk [vmem:[#allocation3 + $0x8] sm:$0xff] %vm35_vm8, %v1166_v26  ;;  %v1085_v43 = vld [vmem:[#allocation3] sm:$0xff]  ;;  %v1329_v26 = vsel %vm1313_vm5, 1.0, %v2848_v6 }
 0x2c4   :  { %v1165_v3 = vsub.f32 %v1085_v43, %v1149_v39  ;;  %v1761_v43 = vpop.eup %1760 }
 0x2c5   :  { %v673_v53 = vpop.xlane.xlu0 %672  ;;  %v1763_v35 = vpop.eup %1762  ;;  %v658_v15 = vmul.f32 %v1761_v43, %v642_v32 }
 0x2c6   :  { %1181 = vst.msk [vmem:[#allocation3] sm:$0xff] %vm35_vm8, %v1165_v3  ;;  %v701_v41 = vadd.f32 %v673_v53, %v653_v44  ;;  %v3264_v3 = vld [vmem:[#allocation39_spill] sm:$0xff]  ;;  %v1765_v53 = vpop.eup %1764 }
 0x2c7   :  { %v3265_v44 = vsub.f32 %v3264_v3, %v2610_v10  ;;  %v1345_v10 = vld [vmem:[#allocation2 + $0x8] sm:$0xff] }
 0x2c8   :  { %718 = vst.msk [vmem:[#allocation3 + $0x18] sm:$0xff] %vm35_vm8, %v701_v41  ;;  %v1151_v41 = vmul.f32 %v1763_v35, %v3266_v50  ;;  %v1425_v35 = vld [vmem:[#allocation5 + $0x8] sm:$0xff] }
 0x2c9   :  { %v689_v29 = vpop.xlane.xlu0 %688  ;;  %v486_v54 = vmul.f32 1.442695, %v3265_v44 }
 0x2ca   :  { %v1361_v24 = vld [vmem:[#allocation3 + $0x8] sm:$0xff]  ;;  %v709_v45 = vadd.f32 %v689_v29, %v661_v27  ;;  %v2875_v27 = vld [vmem:[#allocation4 + $0x18] sm:$0xff]  ;;  %v3268_v29 = vld [vmem:[#allocation45_spill] sm:$0xff] }
 0x2cb   :  { %1766 = vlog2.f32 %v1361_v24  ;;  %v3269_v37 = vsub.f32 %v3267_v42, %v3268_v29  ;;  %vm1315_vm7 = vcmp.lt.f32.partialorder %v2875_v27, 1e-06  ;;  %v2901_v42 = vld [vmem:[#allocation4 + $0x10] sm:$0xff] }
 0x2cc   :  { %1768 = vpow2.f32 %v494_v34  ;;  %726 = vst.msk [vmem:[#allocation3 + $0x58] sm:$0xff] %vm35_vm8, %v709_v45  ;;  %v644_v34 = vld [vmem:[#allocation3 + $0x50] sm:$0xff]  ;;  %vm1314_vm9 = vcmp.lt.f32.partialorder %v2901_v42, 1e-06 }
 0x2cd   :  { %v1360_v18 = vld [vmem:[#allocation3] sm:$0xff]  ;;  %v671_v46 = vpop.xlane.xlu0 %670 }
 0x2ce   :  { %1770 = vlog2.f32 %v1360_v18  ;;  %v700_v13 = vadd.f32 %v671_v46, %v652_v38 }
 0x2cf   :  { %1772 = vpow2.f32 %v500_v14  ;;  %v1088_v22 = vld [vmem:[#allocation3 + $0x18] sm:$0xff]  ;;  %v502_v14 = vmul.f32 1.442695, %v3271_v8 }
 0x2d0   :  { %1774 = vpow2.f32 %v482_v58  ;;  %v1168_v39 = vsub.f32 %v1088_v22, %v1152_v21  ;;  %717 = vst.msk [vmem:[#allocation3 + $0x10] sm:$0xff] %vm35_vm8, %v700_v13  ;;  %v655_v58 = vmul.f32 %v1765_v53, %v639_v47  ;;  %v647_v13 = vld [vmem:[#allocation3 + $0x68] sm:$0xff] }
 0x2d1   :  { %1776 = vrcp.f32 %v1329_v26  ;;  %v1344_v26 = vld [vmem:[#allocation2] sm:$0xff] }
 0x2d2   :  { %1184 = vst.msk [vmem:[#allocation3 + $0x18] sm:$0xff] %vm35_vm8, %v1168_v39  ;;  %1778 = vpow2.f32 %v498_v31  ;;  %v638_v31 = vld [vmem:[#allocation3 + $0x20] sm:$0xff]  ;;  %v3272_v39 = vld [vmem:[#allocation46_spill] sm:$0xff] }
 0x2d3   :  { %v1096_v36 = vld [vmem:[#allocation3 + $0x58] sm:$0xff]  ;;  %1780 = vrcp.f32 %v1328_v23  ;;  %v3273_v43 = vsub.f32 %v3272_v39, %v2644_v19  ;;  %v1331_v19 = vsel %vm1315_vm7, 1.0, %v2875_v27 }
 0x2d4   :  { %v1176_v55 = vsub.f32 %v1096_v36, %v2674_v16  ;;  %1782 = vpow2.f32 %v486_v54  ;;  %v488_v16 = vmul.f32 1.442695, %v3269_v37 }
 0x2d5   :  { %v1767_v2 = vpop.eup %1766  ;;  %v683_v17 = vpop.xlane.xlu1 %682  ;;  %v504_v32 = vmul.f32 1.442695, %v3273_v43 }
 0x2d6   :  { %v1769_v1 = vpop.eup %1768  ;;  %v1379_v30 = vmul.f32 0.6931472, %v1767_v2  ;;  %1192 = vst.msk [vmem:[#allocation3 + $0x58] sm:$0xff] %vm35_vm8, %v1176_v55  ;;  %v706_v45 = vadd.f32 %v683_v17, %v658_v15  ;;  %v1424_v15 = vld [vmem:[#allocation5] sm:$0xff] }
 0x2d7   :  { %v1087_v24 = vld [vmem:[#allocation3 + $0x10] sm:$0xff]  ;;  %v660_v21 = vmul.f32 %v1769_v1, %v644_v34 }
 0x2d8   :  { %v1771_v61 = vpop.eup %1770  ;;  %v1409_v0 = vadd.f32 %v1379_v30, %v1345_v10  ;;  %v1167_v62 = vsub.f32 %v1087_v24, %v1151_v41  ;;  %723 = vst.msk [vmem:[#allocation3 + $0x40] sm:$0xff] %vm35_vm8, %v706_v45  ;;  %v646_v41 = vld [vmem:[#allocation3 + $0x60] sm:$0xff] }
 0x2d9   :  { %v1773_v38 = vpop.eup %1772  ;;  %v1377_v18 = vmul.f32 0.6931472, %v1771_v61  ;;  %v1363_v46 = vld [vmem:[#allocation3 + $0x18] sm:$0xff]  ;;  %v677_v63 = vpop.xlane.xlu0 %676  ;;  %v640_v61 = vld [vmem:[#allocation3 + $0x30] sm:$0xff] }
 0x2da   :  { %v1775_v22 = vpop.eup %1774  ;;  %v1441_v4 = vmul.f32 %v1409_v0, %v2848_v6  ;;  %1784 = vlog2.f32 %v1363_v46  ;;  %1183 = vst.msk [vmem:[#allocation3 + $0x10] sm:$0xff] %vm35_vm8, %v1167_v62  ;;  %v703_v60 = vadd.f32 %v677_v63, %v655_v58  ;;  %v687_v28 = vpop.xlane.xlu1 %686  ;;  %v663_v54 = vmul.f32 %v1773_v38, %v647_v13  ;;  %v2911_v0 = vld [vmem:[#allocation4 + $0x28] sm:$0xff]  ;;  %v641_v63 = vld [vmem:[#allocation3 + $0x38] sm:$0xff] }
 0x2db   :  { %1786 = vpow2.f32 %v488_v16  ;;  %v1408_v23 = vadd.f32 %v1377_v18, %v1344_v26  ;;  %v708_v3 = vadd.f32 %v687_v28, %v660_v21  ;;  %v1777_v6 = vpop.eup %1776  ;;  %v654_v55 = vmul.f32 %v1775_v22, %v638_v31  ;;  %v1347_v13 = vld [vmem:[#allocation2 + $0x18] sm:$0xff]  ;;  %v2924_v31 = vld [vmem:[#allocation4 + $0x48] sm:$0xff] }
 0x2dc   :  { %1788 = vpow2.f32 %v502_v14  ;;  %v1457_v44 = vsub.f32 %v1425_v35, %v1441_v4  ;;  %720 = vst.msk [vmem:[#allocation3 + $0x28] sm:$0xff] %vm35_vm8, %v703_v60  ;;  %v1779_v2 = vpop.eup %1778  ;;  %v2916_v22 = vld [vmem:[#allocation4 + $0x38] sm:$0xff]  ;;  %v648_v4 = vld [vmem:[#allocation3 + $0x70] sm:$0xff]  ;;  %vm1317_vm10 = vcmp.lt.f32.partialorder %v2911_v0, 1e-06 }
 0x2dd   :  { %v1440_v36 = vmul.f32 %v1408_v23, %v2853_v49  ;;  %725 = vst.msk [vmem:[#allocation3 + $0x50] sm:$0xff] %vm35_vm8, %v708_v3  ;;  %v693_v53 = vpop.xlane.xlu0 %692  ;;  %1790 = vpow2.f32 %v504_v32  ;;  %v1781_v34 = vpop.eup %1780  ;;  %v662_v24 = vmul.f32 %v1779_v2, %v646_v41  ;;  %vm1319_vm0 = vcmp.lt.f32.partialorder %v2916_v22, 1e-06  ;;  %v833_v41 = vld [vmem:[#allocation5 + $0x30] sm:$0xff] }
 0x2de   :  { %v1475_v47 = vmul.f32 %v1777_v6, %v1457_v44  ;;  %v711_v1 = vadd.f32 %v693_v53, %v663_v54  ;;  %v675_v50 = vpop.xlane.xlu1 %674  ;;  %v1783_v10 = vpop.eup %1782  ;;  %1792 = vrcp.f32 %v1331_v19  ;;  %v649_v6 = vld [vmem:[#allocation3 + $0x78] sm:$0xff]  ;;  %vm1321_vm2 = vcmp.lt.f32.partialorder %v2924_v31, 1e-06 }
 0x2df   :  { %v1456_v30 = vsub.f32 %v1424_v15, %v1440_v36  ;;  %v702_v17 = vadd.f32 %v675_v50, %v654_v55  ;;  %v1093_v49 = vld [vmem:[#allocation3 + $0x40] sm:$0xff]  ;;  %v656_v46 = vmul.f32 %v1783_v10, %v640_v61  ;;  %v1333_v36 = vsel %vm1317_vm10, 1.0, %v2911_v0  ;;  %v2949_v61 = vld [vmem:[#allocation4 + $0x68] sm:$0xff] }
 0x2e0   :  { %1505 = vst.msk [vmem:[%s3131_s4 + $0x8] sm:$0xff] %vm35_vm8, %v1475_v47  ;;  %728 = vst.msk [vmem:[#allocation3 + $0x68] sm:$0xff] %vm35_vm8, %v711_v1  ;;  %v1173_v16 = vsub.f32 %v1093_v49, %v2782_v5  ;;  %v1335_v15 = vsel %vm1319_vm0, 1.0, %v2916_v22  ;;  %v2940_v47 = vld [vmem:[#allocation4 + $0x58] sm:$0xff]  ;;  %vm1325_vm3 = vcmp.lt.f32.partialorder %v2949_v61, 1e-06 }
 0x2e1   :  { %v1473_v29 = vmul.f32 %v1781_v34, %v1456_v30  ;;  %v1362_v37 = vld [vmem:[#allocation3 + $0x10] sm:$0xff]  ;;  %719 = vst.msk [vmem:[#allocation3 + $0x20] sm:$0xff] %vm35_vm8, %v702_v17  ;;  %vm1323_vm1 = vcmp.lt.f32.partialorder %v2940_v47, 1e-06 }
 0x2e2   :  { %1794 = vlog2.f32 %v1362_v37  ;;  %v691_v45 = vpop.xlane.xlu1 %690  ;;  %1189 = vst.msk [vmem:[#allocation3 + $0x40] sm:$0xff] %vm35_vm8, %v1173_v16  ;;  %v1346_v37 = vld [vmem:[#allocation2 + $0x10] sm:$0xff]  ;;  %v1337_v16 = vsel %vm1321_vm2, 1.0, %v2924_v31 }
 0x2e3   :  { %1504 = vst.msk [vmem:[%s3131_s4] sm:$0xff] %vm35_vm8, %v1473_v29  ;;  %v1090_v9 = vld [vmem:[#allocation3 + $0x28] sm:$0xff]  ;;  %v710_v8 = vadd.f32 %v691_v45, %v662_v24 }
 0x2e4   :  { %v1785_v14 = vpop.eup %1784  ;;  %v1170_v5 = vsub.f32 %v1090_v9, %v2663_v11  ;;  %v1095_v62 = vld [vmem:[#allocation3 + $0x50] sm:$0xff]  ;;  %v1330_v11 = vsel %vm1314_vm9, 1.0, %v2901_v42  ;;  %v1369_v9 = vld [vmem:[#allocation3 + $0x48] sm:$0xff] }
 0x2e5   :  { %v1787_v58 = vpop.eup %1786  ;;  %v1383_v38 = vmul.f32 0.6931472, %v1785_v14  ;;  %v1175_v18 = vsub.f32 %v1095_v62, %v2785_v48  ;;  %727 = vst.msk [vmem:[#allocation3 + $0x60] sm:$0xff] %vm35_vm8, %v710_v8  ;;  %1796 = vrcp.f32 %v1330_v11  ;;  %v834_v14 = vld [vmem:[#allocation5 + $0x38] sm:$0xff] }
 0x2e6   :  { %v1789_v21 = vpop.eup %1788  ;;  %1186 = vst.msk [vmem:[#allocation3 + $0x28] sm:$0xff] %vm35_vm8, %v1170_v5  ;;  %v679_v26 = vpop.xlane.xlu1 %678  ;;  %v657_v32 = vmul.f32 %v1787_v58, %v641_v63  ;;  %1798 = vrcp.f32 %v1333_v36  ;;  %v2956_v5 = vld [vmem:[#allocation4 + $0x20] sm:$0xff] }
 0x2e7   :  { %v1411_v60 = vadd.f32 %v1383_v38, %v1347_v13  ;;  %1191 = vst.msk [vmem:[#allocation3 + $0x50] sm:$0xff] %vm35_vm8, %v1175_v18  ;;  %v1098_v48 = vld [vmem:[#allocation3 + $0x68] sm:$0xff]  ;;  %v704_v28 = vadd.f32 %v679_v26, %v656_v46  ;;  %v1791_v35 = vpop.eup %1790  ;;  %v664_v54 = vmul.f32 %v1789_v21, %v648_v4  ;;  %v835_v58 = vld [vmem:[#allocation5 + $0x40] sm:$0xff]  ;;  %v1339_v21 = vsel %vm1323_vm1, 1.0, %v2940_v47  ;;  %v1426_v13 = vld [vmem:[#allocation5 + $0x10] sm:$0xff] }
 0x2e8   :  { %v1178_v39 = vsub.f32 %v1098_v48, %v2679_v56  ;;  %v1089_v43 = vld [vmem:[#allocation3 + $0x20] sm:$0xff]  ;;  %v1427_v56 = vld [vmem:[#allocation5 + $0x18] sm:$0xff]  ;;  %v1793_v2 = vpop.eup %1792  ;;  %v665_v50 = vmul.f32 %v1791_v35, %v649_v6  ;;  %vm1316_vm11 = vcmp.lt.f32.partialorder %v2956_v5, 1e-06 }
 0x2e9   :  { %v1443_v23 = vmul.f32 %v1411_v60, %v2875_v27  ;;  %v1169_v3 = vsub.f32 %v1089_v43, %v2774_v12  ;;  %721 = vst.msk [vmem:[#allocation3 + $0x30] sm:$0xff] %vm35_vm8, %v704_v28  ;;  %v681_v44 = vpop.xlane.xlu0 %680  ;;  %v1368_v34 = vld [vmem:[#allocation3 + $0x40] sm:$0xff]  ;;  %v836_v60 = vld [vmem:[#allocation5 + $0x48] sm:$0xff] }
 0x2ea   :  { %1194 = vst.msk [vmem:[#allocation3 + $0x68] sm:$0xff] %vm35_vm8, %v1178_v39  ;;  %v705_v53 = vadd.f32 %v681_v44, %v657_v32  ;;  %v695_v55 = vpop.xlane.xlu1 %694  ;;  %v3274_v32 = vld [vmem:[#allocation49_spill] sm:$0xff]  ;;  %v1341_v44 = vsel %vm1325_vm3, 1.0, %v2949_v61 }
 0x2eb   :  { %v1459_v27 = vsub.f32 %v1427_v56, %v1443_v23  ;;  %1185 = vst.msk [vmem:[#allocation3 + $0x20] sm:$0xff] %vm35_vm8, %v1169_v3  ;;  %v712_v12 = vadd.f32 %v695_v55, %v664_v54  ;;  %v837_v3 = vld [vmem:[#allocation5 + $0x50] sm:$0xff]  ;;  %v2975_v54 = vld [vmem:[#allocation4 + $0x78] sm:$0xff] }
 0x2ec   :  { %v1795_v19 = vpop.eup %1794  ;;  %v1097_v1 = vld [vmem:[#allocation3 + $0x60] sm:$0xff]  ;;  %722 = vst.msk [vmem:[#allocation3 + $0x38] sm:$0xff] %vm35_vm8, %v705_v53  ;;  %v1332_v53 = vsel %vm1316_vm11, 1.0, %v2956_v5  ;;  %vm1327_vm13 = vcmp.lt.f32.partialorder %v2975_v54, 1e-06 }
 0x2ed   :  { %v1479_v30 = vmul.f32 %v1793_v2, %v1459_v27  ;;  %v1381_v17 = vmul.f32 0.6931472, %v1795_v19  ;;  %v1365_v49 = vld [vmem:[#allocation3 + $0x28] sm:$0xff]  ;;  %v1177_v10 = vsub.f32 %v1097_v1, %v2788_v25  ;;  %729 = vst.msk [vmem:[#allocation3 + $0x70] sm:$0xff] %vm35_vm8, %v712_v12  ;;  %v697_v29 = vpop.xlane.xlu0 %696  ;;  %v838_v12 = vld [vmem:[#allocation5 + $0x58] sm:$0xff] }
 0x2ee   :  { %1800 = vlog2.f32 %v1365_v49  ;;  %v713_v24 = vadd.f32 %v697_v29, %v665_v50  ;;  %v872_v45 = vpop.xlane.xlu1 %871  ;;  %v1370_v18 = vld [vmem:[#allocation3 + $0x50] sm:$0xff]  ;;  %v839_v49 = vld [vmem:[#allocation5 + $0x60] sm:$0xff] }
 0x2ef   :  { %1802 = vrcp.f32 %v1335_v15  ;;  %1507 = vst.msk [vmem:[%s3131_s4 + $0x18] sm:$0xff] %vm35_vm8, %v1479_v30  ;;  %v1410_v25 = vadd.f32 %v1381_v17, %v1346_v37  ;;  %1193 = vst.msk [vmem:[#allocation3 + $0x60] sm:$0xff] %vm35_vm8, %v1177_v10  ;;  %v897_v8 = vadd.f32 %v872_v45, %v833_v41  ;;  %v1797_v43 = vpop.eup %1796  ;;  %v2986_v15 = vld [vmem:[#allocation4 + $0x50] sm:$0xff] }
 0x2f0   :  { %1804 = vlog2.f32 %v1368_v34  ;;  %v1091_v62 = vld [vmem:[#allocation3 + $0x30] sm:$0xff]  ;;  %730 = vst.msk [vmem:[#allocation3 + $0x78] sm:$0xff] %vm35_vm8, %v713_v24  ;;  %v2984_v19 = vpop.eup %1798  ;;  %vm1322_vm14 = vcmp.lt.f32.partialorder %v2986_v15, 1e-06 }
 0x2f1   :  { %1806 = vrcp.f32 %v1337_v16  ;;  %v1442_v38 = vmul.f32 %v1410_v25, %v2901_v42  ;;  %v1171_v46 = vsub.f32 %v1091_v62, %v2779_v33  ;;  %913 = vst.msk [vmem:[#allocation5 + $0x30] sm:$0xff] %vm35_vm8, %v897_v8  ;;  %v874_v63 = vpop.xlane.xlu0 %873  ;;  %v2967_v42 = vld [vmem:[#allocation4 + $0x40] sm:$0xff]  ;;  %v1371_v33 = vld [vmem:[#allocation3 + $0x58] sm:$0xff]  ;;  %v2994_v30 = vld [vmem:[#allocation4 + $0x30] sm:$0xff] }
 0x2f2   :  { %1808 = vlog2.f32 %v1369_v9  ;;  %v1364_v26 = vld [vmem:[#allocation3 + $0x20] sm:$0xff]  ;;  %v898_v4 = vadd.f32 %v874_v63, %v834_v14  ;;  %v876_v11 = vpop.xlane.xlu1 %875  ;;  %vm1320_vm12 = vcmp.lt.f32.partialorder %v2967_v42, 1e-06  ;;  %v1349_v9 = vld [vmem:[#allocation2 + $0x28] sm:$0xff]  ;;  %vm1318_vm15 = vcmp.lt.f32.partialorder %v2994_v30, 1e-06 }
 0x2f3   :  { %v1458_v48 = vsub.f32 %v1426_v13, %v1442_v38  ;;  %1810 = vlog2.f32 %v1364_v26  ;;  %1187 = vst.msk [vmem:[#allocation3 + $0x30] sm:$0xff] %vm35_vm8, %v1171_v46  ;;  %v1092_v28 = vld [vmem:[#allocation3 + $0x38] sm:$0xff]  ;;  %v899_v39 = vadd.f32 %v876_v11, %v835_v58  ;;  %v1336_v29 = vsel %vm1320_vm12, 1.0, %v2967_v42  ;;  %v840_v38 = vld [vmem:[#allocation5 + $0x68] sm:$0xff]  ;;  %v3016_v63 = vld [vmem:[#allocation4 + $0x60] sm:$0xff] }
 0x2f4   :  { %1812 = vlog2.f32 %v1370_v18  ;;  %v1172_v35 = vsub.f32 %v1092_v28, %v3274_v32  ;;  %v1099_v23 = vld [vmem:[#allocation3 + $0x70] sm:$0xff]  ;;  %914 = vst.msk [vmem:[#allocation5 + $0x38] sm:$0xff] %vm35_vm8, %v898_v4  ;;  %v3014_v46 = vsel %vm1327_vm13, 1.0, %v2975_v54  ;;  %vm1324_vm4 = vcmp.lt.f32.partialorder %v3016_v63, 1e-06 }
 0x2f5   :  { %1814 = vrcp.f32 %v1339_v21  ;;  %v1477_v6 = vmul.f32 %v1797_v43, %v1458_v48  ;;  %v1179_v36 = vsub.f32 %v1099_v23, %v2791_v40  ;;  %915 = vst.msk [vmem:[#allocation5 + $0x40] sm:$0xff] %vm35_vm8, %v899_v39  ;;  %v878_v56 = vpop.xlane.xlu0 %877  ;;  %v1373_v40 = vld [vmem:[#allocation3 + $0x68] sm:$0xff]  ;;  %v3275_v21 = vld [vmem:[#allocation47_spill] sm:$0xff]  ;;  %v1334_v23 = vsel %vm1318_vm15, 1.0, %v2994_v30 }
 0x2f6   :  { %1816 = vlog2.f32 %v1371_v33  ;;  %v1372_v55 = vld [vmem:[#allocation3 + $0x60] sm:$0xff]  ;;  %1188 = vst.msk [vmem:[#allocation3 + $0x38] sm:$0xff] %vm35_vm8, %v1172_v35  ;;  %v900_v2 = vadd.f32 %v878_v56, %v836_v60  ;;  %v880_v27 = vpop.xlane.xlu1 %879  ;;  %v841_v4 = vld [vmem:[#allocation5 + $0x70] sm:$0xff]  ;;  %v1338_v60 = vsel %vm1322_vm14, 1.0, %v2986_v15  ;;  %v1429_v35 = vld [vmem:[#allocation5 + $0x28] sm:$0xff] }
 0x2f7   :  { %1506 = vst.msk [vmem:[%s3131_s4 + $0x10] sm:$0xff] %vm35_vm8, %v1477_v6  ;;  %1818 = vlog2.f32 %v1372_v55  ;;  %1195 = vst.msk [vmem:[#allocation3 + $0x70] sm:$0xff] %vm35_vm8, %v1179_v36  ;;  %v1100_v1 = vld [vmem:[#allocation3 + $0x78] sm:$0xff]  ;;  %v901_v50 = vadd.f32 %v880_v27, %v837_v3  ;;  %v1348_v56 = vld [vmem:[#allocation2 + $0x20] sm:$0xff] }
 0x2f8   :  { %v1801_v41 = vpop.eup %1800  ;;  %1820 = vrcp.f32 %v1341_v44  ;;  %v1180_v17 = vsub.f32 %v1100_v1, %v2682_v20  ;;  %v1251_v34 = vld [vmem:[#allocation5 + $0x30] sm:$0xff]  ;;  %916 = vst.msk [vmem:[#allocation5 + $0x48] sm:$0xff] %vm35_vm8, %v900_v2  ;;  %v842_v2 = vld [vmem:[#allocation5 + $0x78] sm:$0xff] }
 0x2f9   :  { %v2998_v10 = vpop.eup %1802  ;;  %1822 = vrcp.f32 %v1332_v53  ;;  %v1387_v37 = vmul.f32 0.6931472, %v1801_v41  ;;  %v1267_v16 = vsub.f32 %v1251_v34, %v2717_v7  ;;  %917 = vst.msk [vmem:[#allocation5 + $0x50] sm:$0xff] %vm35_vm8, %v901_v50  ;;  %v882_v24 = vpop.xlane.xlu0 %881  ;;  %v3276_v41 = vld [vmem:[#allocation21_spill] sm:$0xff] }
 0x2fa   :  { %v1805_v45 = vpop.eup %1804  ;;  %1824 = vlog2.f32 %v1373_v40  ;;  %v1366_v20 = vld [vmem:[#allocation3 + $0x30] sm:$0xff]  ;;  %1196 = vst.msk [vmem:[#allocation3 + $0x78] sm:$0xff] %vm35_vm8, %v1180_v17  ;;  %v902_v25 = vadd.f32 %v882_v24, %v838_v12  ;;  %v884_v8 = vpop.xlane.xlu1 %883  ;;  %v1352_v12 = vld [vmem:[#allocation2 + $0x40] sm:$0xff] }
 0x2fb   :  { %v3007_v14 = vpop.eup %1806  ;;  %v1413_v62 = vadd.f32 %v1387_v37, %v1349_v9  ;;  %1826 = vlog2.f32 %v1366_v20  ;;  %1283 = vst.msk [vmem:[#allocation5 + $0x30] sm:$0xff] %vm35_vm8, %v1267_v16  ;;  %v1252_v7 = vld [vmem:[#allocation5 + $0x38] sm:$0xff]  ;;  %v903_v58 = vadd.f32 %v884_v8, %v839_v49  ;;  %v1393_v33 = vmul.f32 0.6931472, %v1805_v45  ;;  %v3034_v40 = vld [vmem:[#allocation4 + $0x70] sm:$0xff] }
 0x2fc   :  { %v1809_v18 = vpop.eup %1808  ;;  %1828 = vrcp.f32 %v1336_v29  ;;  %v1268_v13 = vsub.f32 %v1252_v7, %v3275_v21  ;;  %v1253_v26 = vld [vmem:[#allocation5 + $0x40] sm:$0xff]  ;;  %918 = vst.msk [vmem:[#allocation5 + $0x58] sm:$0xff] %vm35_vm8, %v902_v25  ;;  %v1353_v25 = vld [vmem:[#allocation2 + $0x48] sm:$0xff]  ;;  %v1340_v8 = vsel %vm1324_vm4, 1.0, %v3016_v63  ;;  %vm1326_vm5 = vcmp.lt.f32.partialorder %v3034_v40, 1e-06 }
 0x2fd   :  { %v1811_v11 = vpop.eup %1810  ;;  %v1445_v48 = vmul.f32 %v1413_v62, %v2911_v0  ;;  %v1367_v28 = vld [vmem:[#allocation3 + $0x38] sm:$0xff]  ;;  %v1269_v39 = vsub.f32 %v1253_v26, %v2510_v51  ;;  %919 = vst.msk [vmem:[#allocation5 + $0x60] sm:$0xff] %vm35_vm8, %v903_v58  ;;  %v886_v43 = vpop.xlane.xlu0 %885  ;;  %v1395_v1 = vmul.f32 0.6931472, %v1809_v18  ;;  %v1416_v24 = vadd.f32 %v1393_v33, %v1352_v12 }
 0x2fe   :  { %v1813_v32 = vpop.eup %1812  ;;  %v1385_v3 = vmul.f32 0.6931472, %v1811_v11  ;;  %1830 = vlog2.f32 %v1367_v28  ;;  %v1374_v44 = vld [vmem:[#allocation3 + $0x70] sm:$0xff]  ;;  %1284 = vst.msk [vmem:[#allocation5 + $0x38] sm:$0xff] %vm35_vm8, %v1268_v13  ;;  %v904_v6 = vadd.f32 %v886_v43, %v840_v38  ;;  %v888_v36 = vpop.xlane.xlu1 %887 }
 0x2ff   :  { %v3030_v0 = vpop.eup %1814  ;;  %v1461_v51 = vsub.f32 %v1429_v35, %v1445_v48  ;;  %1832 = vlog2.f32 %v1374_v44  ;;  %1285 = vst.msk [vmem:[#allocation5 + $0x40] sm:$0xff] %vm35_vm8, %v1269_v39  ;;  %v1254_v53 = vld [vmem:[#allocation5 + $0x48] sm:$0xff]  ;;  %v905_v55 = vadd.f32 %v888_v36, %v841_v4  ;;  %v1397_v37 = vmul.f32 0.6931472, %v1813_v32  ;;  %v3277_v4 = vld [vmem:[#allocation33_spill] sm:$0xff]  ;;  %v1355_v32 = vld [vmem:[#allocation2 + $0x58] sm:$0xff] }
 0x300   :  { %v1817_v27 = vpop.eup %1816  ;;  %1834 = vrcp.f32 %v1338_v60  ;;  %v1412_v50 = vadd.f32 %v1385_v3, %v1348_v56  ;;  %v1270_v17 = vsub.f32 %v1254_v53, %v3276_v41  ;;  %v1255_v34 = vld [vmem:[#allocation5 + $0x50] sm:$0xff]  ;;  %920 = vst.msk [vmem:[#allocation5 + $0x68] sm:$0xff] %vm35_vm8, %v904_v6  ;;  %v1417_v26 = vadd.f32 %v1395_v1, %v1353_v25  ;;  %v1356_v44 = vld [vmem:[#allocation2 + $0x60] sm:$0xff] }
 0x301   :  { %v1819_v49 = vpop.eup %1818  ;;  %v1483_v29 = vmul.f32 %v2984_v19, %v1461_v51  ;;  %v1375_v16 = vld [vmem:[#allocation3 + $0x78] sm:$0xff]  ;;  %v1271_v45 = vsub.f32 %v1255_v34, %v3224_v52  ;;  %921 = vst.msk [vmem:[#allocation5 + $0x70] sm:$0xff] %vm35_vm8, %v905_v55  ;;  %v890_v9 = vpop.xlane.xlu0 %889  ;;  %v1428_v52 = vld [vmem:[#allocation5 + $0x20] sm:$0xff]  ;;  %v1399_v58 = vmul.f32 0.6931472, %v1817_v27  ;;  %v1448_v48 = vmul.f32 %v1416_v24, %v2967_v42  ;;  %v1350_v6 = vld [vmem:[#allocation2 + $0x30] sm:$0xff] }
 0x302   :  { %v3041_v20 = vpop.eup %1820  ;;  %v1444_v62 = vmul.f32 %v1412_v50, %v2956_v5  ;;  %1836 = vlog2.f32 %v1375_v16  ;;  %1286 = vst.msk [vmem:[#allocation5 + $0x48] sm:$0xff] %vm35_vm8, %v1270_v17  ;;  %v906_v19 = vadd.f32 %v890_v9, %v842_v2  ;;  %v1354_v5 = vld [vmem:[#allocation2 + $0x50] sm:$0xff]  ;;  %v1401_v13 = vmul.f32 0.6931472, %v1819_v49  ;;  %v3278_v27 = vld [vmem:[#allocation42_spill] sm:$0xff]  ;;  %v1351_v24 = vld [vmem:[#allocation2 + $0x38] sm:$0xff] }
 0x303   :  { %v1823_v7 = vpop.eup %1822  ;;  %1838 = vrcp.f32 %v1334_v23  ;;  %1509 = vst.msk [vmem:[%s3131_s4 + $0x28] sm:$0xff] %vm35_vm8, %v1483_v29  ;;  %1287 = vst.msk [vmem:[#allocation5 + $0x50] sm:$0xff] %vm35_vm8, %v1271_v45  ;;  %v1256_v38 = vld [vmem:[#allocation5 + $0x58] sm:$0xff]  ;;  %v1418_v28 = vadd.f32 %v1397_v37, %v1354_v5  ;;  %v1342_v36 = vsel %vm1326_vm5, 1.0, %v3034_v40  ;;  %v1419_v42 = vadd.f32 %v1399_v58, %v1355_v32  ;;  %v1357_v16 = vld [vmem:[#allocation2 + $0x68] sm:$0xff] }
 0x304   :  { %v1825_v18 = vpop.eup %1824  ;;  %v1460_v21 = vsub.f32 %v1428_v52, %v1444_v62  ;;  %v1272_v11 = vsub.f32 %v1256_v38, %v3277_v4  ;;  %v1257_v60 = vld [vmem:[#allocation5 + $0x60] sm:$0xff]  ;;  %922 = vst.msk [vmem:[#allocation5 + $0x78] sm:$0xff] %vm35_vm8, %v906_v19  ;;  %1840 = vrcp.f32 %v3014_v46  ;;  %v1449_v55 = vmul.f32 %v1417_v26, %v2924_v31  ;;  %v3279_v5 = vld [vmem:[#allocation48_spill] sm:$0xff] }
 0x305   :  { %v1827_v33 = vpop.eup %1826  ;;  %v1273_v39 = vsub.f32 %v1257_v60, %v3226_v59  ;;  %1842 = vrcp.f32 %v1340_v8  ;;  %v1403_v46 = vmul.f32 0.6931472, %v1825_v18  ;;  %v1420_v2 = vadd.f32 %v1401_v13, %v1356_v44  ;;  %v1430_v8 = vld [vmem:[#allocation5 + $0x30] sm:$0xff] }
 0x306   :  { %v1829_v43 = vpop.eup %1828  ;;  %v1481_v35 = vmul.f32 %v1823_v7, %v1460_v21  ;;  %v1389_v23 = vmul.f32 0.6931472, %v1827_v33  ;;  %v1432_v3 = vld [vmem:[#allocation5 + $0x40] sm:$0xff]  ;;  %1288 = vst.msk [vmem:[#allocation5 + $0x58] sm:$0xff] %vm35_vm8, %v1272_v11  ;;  %v1450_v49 = vmul.f32 %v1418_v28, %v2986_v15  ;;  %1844 = vrcp.f32 %v1342_v36 }
 0x307   :  { %v1464_v56 = vsub.f32 %v1432_v3, %v1448_v48  ;;  %1289 = vst.msk [vmem:[#allocation5 + $0x60] sm:$0xff] %vm35_vm8, %v1273_v39  ;;  %v1258_v59 = vld [vmem:[#allocation5 + $0x68] sm:$0xff]  ;;  %v1421_v19 = vadd.f32 %v1403_v46, %v1357_v16  ;;  %v1452_v18 = vmul.f32 %v1420_v2, %v3016_v63  ;;  %v1431_v48 = vld [vmem:[#allocation5 + $0x38] sm:$0xff] }
 0x308   :  { %v1831_v51 = vpop.eup %1830  ;;  %1508 = vst.msk [vmem:[%s3131_s4 + $0x20] sm:$0xff] %vm35_vm8, %v1481_v35  ;;  %v1414_v53 = vadd.f32 %v1389_v23, %v1350_v6  ;;  %v1274_v12 = vsub.f32 %v1258_v59, %v3278_v27  ;;  %v1259_v1 = vld [vmem:[#allocation5 + $0x70] sm:$0xff]  ;;  %v1359_v39 = vld [vmem:[#allocation2 + $0x78] sm:$0xff] }
 0x309   :  { %v1833_v50 = vpop.eup %1832  ;;  %v1391_v41 = vmul.f32 0.6931472, %v1831_v51  ;;  %v1489_v17 = vmul.f32 %v1829_v43, %v1464_v56  ;;  %v1433_v34 = vld [vmem:[#allocation5 + $0x48] sm:$0xff]  ;;  %v1275_v29 = vsub.f32 %v1259_v1, %v2723_v57  ;;  %v1451_v57 = vmul.f32 %v1419_v42, %v2940_v47 }
 0x30a   :  { %v1835_v37 = vpop.eup %1834  ;;  %v1405_v45 = vmul.f32 0.6931472, %v1833_v50  ;;  %v1446_v9 = vmul.f32 %v1414_v53, %v2994_v30  ;;  %v1465_v31 = vsub.f32 %v1433_v34, %v1449_v55  ;;  %v1434_v25 = vld [vmem:[#allocation5 + $0x50] sm:$0xff]  ;;  %1290 = vst.msk [vmem:[#allocation5 + $0x68] sm:$0xff] %vm35_vm8, %v1274_v12  ;;  %v1453_v23 = vmul.f32 %v1421_v19, %v2949_v61 }
 0x30b   :  { %v1415_v62 = vadd.f32 %v1391_v41, %v1351_v24  ;;  %1512 = vst.msk [vmem:[%s3131_s4 + $0x40] sm:$0xff] %vm35_vm8, %v1489_v17  ;;  %v1466_v15 = vsub.f32 %v1434_v25, %v1450_v49  ;;  %1291 = vst.msk [vmem:[#allocation5 + $0x70] sm:$0xff] %vm35_vm8, %v1275_v29  ;;  %v1260_v7 = vld [vmem:[#allocation5 + $0x78] sm:$0xff]  ;;  %v1358_v30 = vld [vmem:[#allocation2 + $0x70] sm:$0xff] }
 0x30c   :  { %v1837_v52 = vpop.eup %1836  ;;  %v1462_v58 = vsub.f32 %v1430_v8, %v1446_v9  ;;  %v1491_v38 = vmul.f32 %v3007_v14, %v1465_v31  ;;  %v1276_v21 = vsub.f32 %v1260_v7, %v3279_v5  ;;  %v1422_v47 = vadd.f32 %v1405_v45, %v1358_v30 }
 0x30d   :  { %v1839_v13 = vpop.eup %1838  ;;  %v1407_v26 = vmul.f32 0.6931472, %v1837_v52  ;;  %v1447_v4 = vmul.f32 %v1415_v62, %v2916_v22  ;;  %v1493_v11 = vmul.f32 %v1835_v37, %v1466_v15  ;;  %v1435_v60 = vld [vmem:[#allocation5 + $0x58] sm:$0xff] }
 0x30e   :  { %v1485_v33 = vmul.f32 %v1839_v13, %v1462_v58  ;;  %1513 = vst.msk [vmem:[%s3131_s4 + $0x48] sm:$0xff] %vm35_vm8, %v1491_v38  ;;  %v1467_v28 = vsub.f32 %v1435_v60, %v1451_v57  ;;  %v1436_v14 = vld [vmem:[#allocation5 + $0x60] sm:$0xff]  ;;  %1292 = vst.msk [vmem:[#allocation5 + $0x78] sm:$0xff] %vm35_vm8, %v1276_v21  ;;  %v1841_v63 = vpop.eup %1840  ;;  %v1454_v46 = vmul.f32 %v1422_v47, %v3034_v40 }
 0x30f   :  { %v1463_v43 = vsub.f32 %v1431_v48, %v1447_v4  ;;  %1514 = vst.msk [vmem:[%s3131_s4 + $0x50] sm:$0xff] %vm35_vm8, %v1493_v11  ;;  %v1468_v22 = vsub.f32 %v1436_v14, %v1452_v18  ;;  %v1843_v32 = vpop.eup %1842  ;;  %v1423_v3 = vadd.f32 %v1407_v26, %v1359_v39 }
 0x310   :  { %1510 = vst.msk [vmem:[%s3131_s4 + $0x30] sm:$0xff] %vm35_vm8, %v1485_v33  ;;  %v1495_v35 = vmul.f32 %v3030_v0, %v1467_v28 }
 0x311   :  { %v1487_v44 = vmul.f32 %v2998_v10, %v1463_v43  ;;  %v1497_v6 = vmul.f32 %v1843_v32, %v1468_v22  ;;  %v1437_v36 = vld [vmem:[#allocation5 + $0x68] sm:$0xff]  ;;  %v1845_v10 = vpop.eup %1844  ;;  %v1455_v40 = vmul.f32 %v1423_v3, %v2975_v54 }
 0x312   :  { %1515 = vst.msk [vmem:[%s3131_s4 + $0x58] sm:$0xff] %vm35_vm8, %v1495_v35  ;;  %v1469_v56 = vsub.f32 %v1437_v36, %v1453_v23  ;;  %v1438_v42 = vld [vmem:[#allocation5 + $0x70] sm:$0xff] }
 0x313   :  { %1511 = vst.msk [vmem:[%s3131_s4 + $0x38] sm:$0xff] %vm35_vm8, %v1487_v44  ;;  %1516 = vst.msk [vmem:[%s3131_s4 + $0x60] sm:$0xff] %vm35_vm8, %v1497_v6  ;;  %v1470_v61 = vsub.f32 %v1438_v42, %v1454_v46 }
 0x314   :  { %v1499_v0 = vmul.f32 %v3041_v20, %v1469_v56 }
 0x315   :  { %v1501_v59 = vmul.f32 %v1845_v10, %v1470_v61  ;;  %v1439_v51 = vld [vmem:[#allocation5 + $0x78] sm:$0xff] }
 0x316   :  { %1517 = vst.msk [vmem:[%s3131_s4 + $0x68] sm:$0xff] %vm35_vm8, %v1499_v0  ;;  %v1471_v53 = vsub.f32 %v1439_v51, %v1455_v40 }
 0x317   :  { %1518 = vst.msk [vmem:[%s3131_s4 + $0x70] sm:$0xff] %vm35_vm8, %v1501_v59 }
 0x318   :  { %v1503_v55 = vmul.f32 %v1841_v63, %v1471_v53 }
 0x31a   :  { %1519 = vst.msk [vmem:[%s3131_s4 + $0x78] sm:$0xff] %vm35_vm8, %v1503_v55 }
 0x31b   :  { %1524 = vsyncpa [#allocation7], 1 }

</bundles_post_ra>
